<compile_context>
chip_gen: v5e
topology: v5e:2x2
jax: 0.10.0
libtpu: 0.0.40
codegen_flags: <defaults>
</compile_context>

<pallas_src>
import numpy as np
import jax
import jax.numpy as jnp
from jax import lax
from jax.experimental import pallas as pl
from jax.experimental.pallas import tpu as pltpu


def _round_up(x, m):
    return ((x + m - 1) // m) * m


# ---------------------------------------------------------------------------
# Fused kernel: pyramidal max-pool + input projection + bidirectional LSTM
# recurrence.  grid = (time chunks,); forward walks chunks 0..NC-1, reverse
# walks NC-1..0 via its own x / output views.  h/c state is carried across
# chunks in VMEM scratch.
# ---------------------------------------------------------------------------
def make_pblstm_kernel(CH, Bp, D, Hp):
    G = 4 * Hp

    def kernel(xf_ref, xr_ref, lx2_ref, wih_ref, b_ref, whh_ref,
               outf_ref, outr_ref, hn_ref, cn_ref,
               gxf_sc, gxr_sc, h_sc, c_sc):
        c = pl.program_id(0)
        nc = pl.num_programs(0)

        @pl.when(c == 0)
        def _():
            h_sc[...] = jnp.zeros_like(h_sc)
            c_sc[...] = jnp.zeros_like(c_sc)

        # ---- fused frame-pair max-pool + hoisted input projection --------
        # One well-filled (CH*Bp, D) x (D, 4Hp) bf16 MXU matmul per direction
        # per chunk; results (f32, bias added) stay in VMEM scratch.
        def project(x_ref, d, gx_sc):
            pooled = jnp.max(x_ref[...], axis=1)          # (CH, Bp, D) bf16
            g = jnp.dot(pooled.reshape(CH * Bp, D), wih_ref[d],
                        preferred_element_type=jnp.float32)
            gx_sc[...] = (g + b_ref[d]).reshape(CH, Bp, G)

        project(xf_ref, 0, gxf_sc)
        project(xr_ref, 1, gxr_sc)

        lx2 = lx2_ref[...]                                 # (Bp, 1) int32
        t0_f = c * CH                                      # fwd chunk time base
        t0_r = (nc - 1 - c) * CH                           # rev chunk time base

        def lstm_cell(gates, c_prev):
            # Hp is a multiple of 128 -> lane-aligned gate slices (no XLU).
            i = jax.nn.sigmoid(gates[:, 0:Hp])
            f = jax.nn.sigmoid(gates[:, Hp:2 * Hp])
            g = jnp.tanh(gates[:, 2 * Hp:3 * Hp])
            o = jax.nn.sigmoid(gates[:, 3 * Hp:4 * Hp])
            c_new = f * c_prev + i * g
            return o * jnp.tanh(c_new), c_new

        def body(s, carry):
            hf, cf, hr, cr = carry
            # -------- forward direction: local step s --------------------
            gf = gxf_sc[s] + jnp.dot(hf.astype(jnp.bfloat16), whh_ref[0],
                                     preferred_element_type=jnp.float32)
            hf_new, cf_new = lstm_cell(gf, cf)
            mf = (t0_f + s) < lx2                          # (Bp, 1) valid mask
            outf_ref[s] = jnp.where(mf, hf_new, 0.0)       # full-width store
            hf = jnp.where(mf, hf_new, hf)
            cf = jnp.where(mf, cf_new, cf)
            # -------- reverse direction: local step CH-1-s ----------------
            lt = CH - 1 - s
            gr = gxr_sc[lt] + jnp.dot(hr.astype(jnp.bfloat16), whh_ref[1],
                                      preferred_element_type=jnp.float32)
            hr_new, cr_new = lstm_cell(gr, cr)
            mr = (t0_r + lt) < lx2
            outr_ref[lt] = jnp.where(mr, hr_new, 0.0)
            hr = jnp.where(mr, hr_new, hr)
            cr = jnp.where(mr, cr_new, cr)
            return hf, cf, hr, cr

        hf, cf, hr, cr = lax.fori_loop(
            0, CH, body, (h_sc[0], c_sc[0], h_sc[1], c_sc[1]))
        h_sc[0] = hf
        c_sc[0] = cf
        h_sc[1] = hr
        c_sc[1] = cr

        @pl.when(c == nc - 1)
        def _():
            hn_ref[0] = hf
            hn_ref[1] = hr
            cn_ref[0] = cf
            cn_ref[1] = cr

    return kernel


# ---------------------------------------------------------------------------
# Parameter init (mirrors nn.LSTM: U(-1/sqrt(H), 1/sqrt(H)); weights stored
# pre-transposed for x @ W; the two biases are summed, which is identical).
# ---------------------------------------------------------------------------
def init_pblstm_params(key, input_size, hidden_size):
    D, H = input_size, hidden_size
    k = 1.0 / np.sqrt(H)
    ks = jax.random.split(key, 8)
    u = lambda kk, shp: jax.random.uniform(kk, shp, jnp.float32, -k, k)
    return {
        "wih_f": u(ks[0], (D, 4 * H)),
        "whh_f": u(ks[1], (H, 4 * H)),
        "b_f":   (u(ks[2], (1, 4 * H)) + u(ks[3], (1, 4 * H))),
        "wih_b": u(ks[4], (D, 4 * H)),
        "whh_b": u(ks[5], (H, 4 * H)),
        "b_b":   (u(ks[6], (1, 4 * H)) + u(ks[7], (1, 4 * H))),
    }


# ---------------------------------------------------------------------------
# Wrapper
# ---------------------------------------------------------------------------
def pblstm_forward(x, lx, params, hidden_size, last_layer=False):
    """x: (B, T, D) float32, lx: (B,) int32.
    Returns padded BiLSTM output (B, T//2, 2H) (zeros past lx//2), the halved
    lengths, and (h_n, c_n) if last_layer."""
    B, T, D = x.shape
    H = hidden_size
    T2 = T // 2
    if T2 == 0:
        raise ValueError("pBLSTM needs at least 2 time frames")

    f32 = jnp.float32
    Hp = _round_up(H, 128)        # lane-aligned gates / outputs
    Bp = _round_up(B, 8)          # full sublane tiles per step
    G = 4 * Hp

    # ---- generation-aware VMEM budget (v7x: 64 MiB/TC, v5e/v6e: 128 MiB) ----
    try:
        vmem_cap = int(pltpu.get_tpu_info().vmem_capacity_bytes)
    except Exception:
        vmem_cap = 64 * 1024 * 1024
    vmem_limit = int(min(max(vmem_cap // 2, 16 * 1024 * 1024), 64 * 1024 * 1024))
    budget = max(vmem_limit // 3, 4 * 1024 * 1024)

    # streamed VMEM bytes per pooled step: x blocks (bf16, 2 dirs, 2x buffered)
    # + out blocks (f32, 2 dirs, 2x buffered) + gate scratch (f32, 2 dirs)
    per_step = Bp * (16 * D + 48 * Hp)
    CH = max(8, (budget // per_step) // 8 * 8)
    CH = min(CH, _round_up(T2, 8))
    NC = pl.cdiv(T2, CH)
    T2P = NC * CH

    # ---- single time-major, padded bf16 copy of x (pairs pre-split) --------
    x_tm = jnp.transpose(x.astype(jnp.bfloat16)[:, :2 * T2, :], (1, 0, 2))
    x_tm = jnp.pad(x_tm, ((0, 2 * (T2P - T2)), (0, Bp - B), (0, 0)))
    x_tm = x_tm.reshape(T2P, 2, Bp, D)                     # metadata-only

    # ---- pad parameters per-gate to Hp (zeros keep padded hidden units 0) --
    def pad_gates(w):                                      # (..., 4H) -> (..., 4Hp)
        lead = w.shape[:-1]
        w = w.reshape(lead + (4, H))
        w = jnp.pad(w, [(0, 0)] * len(lead) + [(0, 0), (0, Hp - H)])
        return w.reshape(lead + (G,))

    wih = jnp.stack([pad_gates(params["wih_f"]),
                     pad_gates(params["wih_b"])]).astype(jnp.bfloat16)   # (2,D,4Hp)
    bias = jnp.stack([pad_gates(params["b_f"]),
                      pad_gates(params["b_b"])]).astype(f32)             # (2,1,4Hp)
    whh = jnp.stack([
        jnp.pad(pad_gates(params["whh_f"]), ((0, Hp - H), (0, 0))),
        jnp.pad(pad_gates(params["whh_b"]), ((0, Hp - H), (0, 0))),
    ]).astype(jnp.bfloat16)                                              # (2,Hp,4Hp)

    lx2 = lx.astype(jnp.int32) // 2
    lx2p = jnp.pad(lx2, (0, Bp - B)).reshape(Bp, 1)

    out_f, out_r, h_n, c_n = pl.pallas_call(
        make_pblstm_kernel(CH, Bp, D, Hp),
        out_shape=(
            jax.ShapeDtypeStruct((T2P, Bp, Hp), f32),      # forward outputs
            jax.ShapeDtypeStruct((T2P, Bp, Hp), f32),      # reverse outputs
            jax.ShapeDtypeStruct((2, Bp, Hp), f32),        # h_n
            jax.ShapeDtypeStruct((2, Bp, Hp), f32),        # c_n
        ),
        grid_spec=pltpu.PrefetchScalarGridSpec(
            num_scalar_prefetch=0,
            grid=(NC,),
            in_specs=[
                pl.BlockSpec((CH, 2, Bp, D), lambda c: (c, 0, 0, 0)),           # x fwd
                pl.BlockSpec((CH, 2, Bp, D), lambda c: (NC - 1 - c, 0, 0, 0)),  # x rev
                pl.BlockSpec((Bp, 1), lambda c: (0, 0)),
                pl.BlockSpec((2, D, G), lambda c: (0, 0, 0)),
                pl.BlockSpec((2, 1, G), lambda c: (0, 0, 0)),
                pl.BlockSpec((2, Hp, G), lambda c: (0, 0, 0)),
            ],
            out_specs=[
                pl.BlockSpec((CH, Bp, Hp), lambda c: (c, 0, 0)),
                pl.BlockSpec((CH, Bp, Hp), lambda c: (NC - 1 - c, 0, 0)),
                pl.BlockSpec((2, Bp, Hp), lambda c: (0, 0, 0)),
                pl.BlockSpec((2, Bp, Hp), lambda c: (0, 0, 0)),
            ],
            scratch_shapes=[
                pltpu.VMEM((CH, Bp, G), f32),              # fwd gates (chunk)
                pltpu.VMEM((CH, Bp, G), f32),              # rev gates (chunk)
                pltpu.VMEM((2, Bp, Hp), f32),              # h state (fwd, rev)
                pltpu.VMEM((2, Bp, Hp), f32),              # c state (fwd, rev)
            ],
        ),
        compiler_params=pltpu.CompilerParams(
            dimension_semantics=("arbitrary",),
            vmem_limit_bytes=vmem_limit),
    )(x_tm, x_tm, lx2p, wih, bias, whh)

    # (T2P, Bp, Hp) x2 -> (B, T2, 2H)
    out = jnp.concatenate(
        [jnp.transpose(out_f[:T2, :B, :H], (1, 0, 2)),
         jnp.transpose(out_r[:T2, :B, :H], (1, 0, 2))], axis=-1)
    lx_half = lx // 2
    if last_layer:
        return out, (h_n[:, :B, :H], c_n[:, :B, :H]), lx_half
    return out, lx_half


# ---------------- pure-JAX f32 reference (sanity check) ----------------
def pblstm_reference(x, lx, params, H):
    B, T, D = x.shape
    T2 = T // 2
    xp = x[:, :2 * T2].reshape(B, T2, 2, D).max(axis=2)
    lx2 = lx // 2

    def run_dir(wih, whh, b, reverse):
        def step(carry, inp):
            h, c = carry
            x_t, t = inp
            gates = x_t @ wih + h @ whh + b
            i = jax.nn.sigmoid(gates[:, :H])
            f = jax.nn.sigmoid(gates[:, H:2 * H])
            g = jnp.tanh(gates[:, 2 * H:3 * H])
            o = jax.nn.sigmoid(gates[:, 3 * H:])
            c_new = f * c + i * g
            h_new = o * jnp.tanh(c_new)
            mask = (t < lx2)[:, None]
            return ((jnp.where(mask, h_new, h), jnp.where(mask, c_new, c)),
                    jnp.where(mask, h_new, 0.0))

        xs = jnp.transpose(xp, (1, 0, 2))
        ts = jnp.arange(T2)
        if reverse:
            xs, ts = xs[::-1], ts[::-1]
        (h, c), outs = lax.scan(step, (jnp.zeros((B, H)), jnp.zeros((B, H))), (xs, ts))
        if reverse:
            outs = outs[::-1]
        return jnp.transpose(outs, (1, 0, 2)), h, c

    of, hf, cf = run_dir(params["wih_f"], params["whh_f"], params["b_f"], False)
    ob, hb, cb = run_dir(params["wih_b"], params["whh_b"], params["b_b"], True)
    return (jnp.concatenate([of, ob], -1),
            jnp.stack([hf, hb]), jnp.stack([cf, cb]))


if __name__ == "__main__":
    B, T, D, H = 4, 9, 16, 32            # odd T exercises the truncation path
    key = jax.random.PRNGKey(0)
    kx, kp = jax.random.split(key)
    x = jax.random.normal(kx, (B, T, D), jnp.float32)
    lx = jnp.array([9, 7, 5, 2], jnp.int32)

    params = init_pblstm_params(kp, D, H)

    out, (h_n, c_n), lx_half = pblstm_forward(x, lx, params, H, last_layer=True)
    out, h_n, c_n = jax.block_until_ready((out, h_n, c_n))

    ref_out, ref_hn, ref_cn = pblstm_reference(x, lx, params, H)

    assert out.shape == (B, T // 2, 2 * H)
    assert h_n.shape == (2, B, H) and c_n.shape == (2, B, H)
    assert np.asarray(lx_half).tolist() == [4, 3, 2, 1]
    np.testing.assert_allclose(np.asarray(out), np.asarray(ref_out),
                               atol=5e-2, rtol=5e-2)
    np.testing.assert_allclose(np.asarray(h_n), np.asarray(ref_hn),
                               atol=5e-2, rtol=5e-2)
    np.testing.assert_allclose(np.asarray(c_n), np.asarray(ref_cn),
                               atol=5e-2, rtol=5e-2)
    print("KERNEL_OK")
</pallas_src>

<mosaic_0001>
module attributes {stable_mosaic.version = 11 : i64} {
  func.func @kernel(%arg0: i32, %arg1: memref<8x2x8x16xbf16, #tpu.memory_space<vmem>>, %arg2: memref<8x2x8x16xbf16, #tpu.memory_space<vmem>>, %arg3: memref<8x1xi32, #tpu.memory_space<vmem>>, %arg4: memref<2x16x512xbf16, #tpu.memory_space<vmem>>, %arg5: memref<2x1x512xf32, #tpu.memory_space<vmem>>, %arg6: memref<2x128x512xbf16, #tpu.memory_space<vmem>>, %arg7: memref<8x8x128xf32, #tpu.memory_space<vmem>>, %arg8: memref<8x8x128xf32, #tpu.memory_space<vmem>>, %arg9: memref<2x8x128xf32, #tpu.memory_space<vmem>>, %arg10: memref<2x8x128xf32, #tpu.memory_space<vmem>>, %arg11: memref<8x8x512xf32, #tpu.memory_space<vmem>>, %arg12: memref<8x8x512xf32, #tpu.memory_space<vmem>>, %arg13: memref<2x8x128xf32, #tpu.memory_space<vmem>>, %arg14: memref<2x8x128xf32, #tpu.memory_space<vmem>>) attributes {dimension_semantics = [#tpu.dimension_semantics<arbitrary>], iteration_bounds = array<i64: 1>, scalar_prefetch = 0 : i64, scratch_operands = 4 : i64, tpu.core_type = #tpu.core_type<tc>, window_params = [{transform_indices = @transform_0, window_bounds = array<i64: 8, 2, 8, 16>}, {transform_indices = @transform_1, window_bounds = array<i64: 8, 2, 8, 16>}, {pipeline_mode = #tpu.pipeline_mode<synchronous>, transform_indices = @transform_2, window_bounds = array<i64: 8, 1>}, {pipeline_mode = #tpu.pipeline_mode<synchronous>, transform_indices = @transform_3, window_bounds = array<i64: 2, 16, 512>}, {pipeline_mode = #tpu.pipeline_mode<synchronous>, transform_indices = @transform_4, window_bounds = array<i64: 2, 1, 512>}, {pipeline_mode = #tpu.pipeline_mode<synchronous>, transform_indices = @transform_5, window_bounds = array<i64: 2, 128, 512>}, {transform_indices = @transform_6, window_bounds = array<i64: 8, 8, 128>}, {transform_indices = @transform_7, window_bounds = array<i64: 8, 8, 128>}, {pipeline_mode = #tpu.pipeline_mode<synchronous>, transform_indices = @transform_8, window_bounds = array<i64: 2, 8, 128>}, {pipeline_mode = #tpu.pipeline_mode<synchronous>, transform_indices = @transform_9, window_bounds = array<i64: 2, 8, 128>}]} {
    %c0_i32 = arith.constant 0 : i32
    %0 = arith.cmpi eq, %arg0, %c0_i32 : i32
    %1 = arith.extui %0 : i1 to i32
    %c0_i32_0 = arith.constant 0 : i32
    %2 = arith.cmpi ne, %1, %c0_i32_0 : i32
    scf.if %2 {
      %cst_61 = arith.constant 0.000000e+00 : f32
      %56 = vector.broadcast %cst_61 : f32 to vector<2x8x128xf32>
      %c0_62 = arith.constant 0 : index
      %c0_63 = arith.constant 0 : index
      %c0_64 = arith.constant 0 : index
      %57 = vector.load %arg13[%c0_62, %c0_63, %c0_64] : memref<2x8x128xf32, #tpu.memory_space<vmem>>, vector<2x8x128xf32>
      tpu.vector_store %arg13[%c0_62, %c0_63, %c0_64], %56 {strides = array<i32>} : memref<2x8x128xf32, #tpu.memory_space<vmem>>, vector<2x8x128xf32>,
      %cst_65 = arith.constant 0.000000e+00 : f32
      %58 = vector.broadcast %cst_65 : f32 to vector<2x8x128xf32>
      %c0_66 = arith.constant 0 : index
      %c0_67 = arith.constant 0 : index
      %c0_68 = arith.constant 0 : index
      %59 = vector.load %arg14[%c0_66, %c0_67, %c0_68] : memref<2x8x128xf32, #tpu.memory_space<vmem>>, vector<2x8x128xf32>
      tpu.vector_store %arg14[%c0_66, %c0_67, %c0_68], %58 {strides = array<i32>} : memref<2x8x128xf32, #tpu.memory_space<vmem>>, vector<2x8x128xf32>,
    } else {
    }
    %c0 = arith.constant 0 : index
    %c0_1 = arith.constant 0 : index
    %c0_2 = arith.constant 0 : index
    %c0_3 = arith.constant 0 : index
    %3 = vector.load %arg1[%c0, %c0_1, %c0_2, %c0_3] : memref<8x2x8x16xbf16, #tpu.memory_space<vmem>>, vector<8x2x8x16xbf16>
    %cst = arith.constant dense<0xFF80> : vector<8x8x16xbf16>
    %4 = vector.multi_reduction <maximumf>, %3, %cst [1] : vector<8x2x8x16xbf16> to vector<8x8x16xbf16>
    %5 = vector.shape_cast %4 : vector<8x8x16xbf16> to vector<64x16xbf16>
    %c0_4 = arith.constant 0 : index
    %c0_5 = arith.constant 0 : index
    %c0_6 = arith.constant 0 : index
    %6 = vector.load %arg4[%c0_4, %c0_5, %c0_6] : memref<2x16x512xbf16, #tpu.memory_space<vmem>>, vector<1x16x512xbf16>
    %7 = vector.shape_cast %6 : vector<1x16x512xbf16> to vector<16x512xbf16>
    %cst_7 = arith.constant dense<0.000000e+00> : vector<64x512xf32>
    %8 = tpu.matmul %5, %7, %cst_7 {dimension_numbers = #tpu.dot_dimension_numbers<[1], [0], [0], [1], [0, 0, 1, 1], [], []>} : vector<64x16xbf16>, vector<16x512xbf16>, vector<64x512xf32> -> vector<64x512xf32>
    %c0_8 = arith.constant 0 : index
    %c0_9 = arith.constant 0 : index
    %c0_10 = arith.constant 0 : index
    %9 = vector.load %arg5[%c0_8, %c0_9, %c0_10] : memref<2x1x512xf32, #tpu.memory_space<vmem>>, vector<1x1x512xf32>
    %10 = vector.shape_cast %9 : vector<1x1x512xf32> to vector<1x512xf32>
    %11 = vector.broadcast %10 : vector<1x512xf32> to vector<64x512xf32>
    %12 = arith.addf %8, %11 : vector<64x512xf32>
    %13 = vector.shape_cast %12 : vector<64x512xf32> to vector<8x8x512xf32>
    %c0_11 = arith.constant 0 : index
    %c0_12 = arith.constant 0 : index
    %c0_13 = arith.constant 0 : index
    %14 = vector.load %arg11[%c0_11, %c0_12, %c0_13] : memref<8x8x512xf32, #tpu.memory_space<vmem>>, vector<8x8x512xf32>
    tpu.vector_store %arg11[%c0_11, %c0_12, %c0_13], %13 {strides = array<i32>} : memref<8x8x512xf32, #tpu.memory_space<vmem>>, vector<8x8x512xf32>,
    %c0_14 = arith.constant 0 : index
    %c0_15 = arith.constant 0 : index
    %c0_16 = arith.constant 0 : index
    %c0_17 = arith.constant 0 : index
    %15 = vector.load %arg2[%c0_14, %c0_15, %c0_16, %c0_17] : memref<8x2x8x16xbf16, #tpu.memory_space<vmem>>, vector<8x2x8x16xbf16>
    %cst_18 = arith.constant dense<0xFF80> : vector<8x8x16xbf16>
    %16 = vector.multi_reduction <maximumf>, %15, %cst_18 [1] : vector<8x2x8x16xbf16> to vector<8x8x16xbf16>
    %17 = vector.shape_cast %16 : vector<8x8x16xbf16> to vector<64x16xbf16>
    %c1 = arith.constant 1 : index
    %c0_19 = arith.constant 0 : index
    %c0_20 = arith.constant 0 : index
    %18 = vector.load %arg4[%c1, %c0_19, %c0_20] : memref<2x16x512xbf16, #tpu.memory_space<vmem>>, vector<1x16x512xbf16>
    %19 = vector.shape_cast %18 : vector<1x16x512xbf16> to vector<16x512xbf16>
    %cst_21 = arith.constant dense<0.000000e+00> : vector<64x512xf32>
    %20 = tpu.matmul %17, %19, %cst_21 {dimension_numbers = #tpu.dot_dimension_numbers<[1], [0], [0], [1], [0, 0, 1, 1], [], []>} : vector<64x16xbf16>, vector<16x512xbf16>, vector<64x512xf32> -> vector<64x512xf32>
    %c1_22 = arith.constant 1 : index
    %c0_23 = arith.constant 0 : index
    %c0_24 = arith.constant 0 : index
    %21 = vector.load %arg5[%c1_22, %c0_23, %c0_24] : memref<2x1x512xf32, #tpu.memory_space<vmem>>, vector<1x1x512xf32>
    %22 = vector.shape_cast %21 : vector<1x1x512xf32> to vector<1x512xf32>
    %23 = vector.broadcast %22 : vector<1x512xf32> to vector<64x512xf32>
    %24 = arith.addf %20, %23 : vector<64x512xf32>
    %25 = vector.shape_cast %24 : vector<64x512xf32> to vector<8x8x512xf32>
    %c0_25 = arith.constant 0 : index
    %c0_26 = arith.constant 0 : index
    %c0_27 = arith.constant 0 : index
    %26 = vector.load %arg12[%c0_25, %c0_26, %c0_27] : memref<8x8x512xf32, #tpu.memory_space<vmem>>, vector<8x8x512xf32>
    tpu.vector_store %arg12[%c0_25, %c0_26, %c0_27], %25 {strides = array<i32>} : memref<8x8x512xf32, #tpu.memory_space<vmem>>, vector<8x8x512xf32>,
    %c0_28 = arith.constant 0 : index
    %c0_29 = arith.constant 0 : index
    %27 = vector.load %arg3[%c0_28, %c0_29] : memref<8x1xi32, #tpu.memory_space<vmem>>, vector<8x1xi32>
    %c8_i32 = arith.constant 8 : i32
    %28 = arith.muli %arg0, %c8_i32 : i32
    %c0_i32_30 = arith.constant 0 : i32
    %29 = arith.subi %c0_i32_30, %arg0 : i32
    %c8_i32_31 = arith.constant 8 : i32
    %30 = arith.muli %29, %c8_i32_31 : i32
    %c0_32 = arith.constant 0 : index
    %c0_33 = arith.constant 0 : index
    %c0_34 = arith.constant 0 : index
    %31 = vector.load %arg13[%c0_32, %c0_33, %c0_34] : memref<2x8x128xf32, #tpu.memory_space<vmem>>, vector<1x8x128xf32>
    %32 = vector.shape_cast %31 : vector<1x8x128xf32> to vector<8x128xf32>
    %c0_35 = arith.constant 0 : index
    %c0_36 = arith.constant 0 : index
    %c0_37 = arith.constant 0 : index
    %33 = vector.load %arg14[%c0_35, %c0_36, %c0_37] : memref<2x8x128xf32, #tpu.memory_space<vmem>>, vector<1x8x128xf32>
    %34 = vector.shape_cast %33 : vector<1x8x128xf32> to vector<8x128xf32>
    %c1_38 = arith.constant 1 : index
    %c0_39 = arith.constant 0 : index
    %c0_40 = arith.constant 0 : index
    %35 = vector.load %arg13[%c1_38, %c0_39, %c0_40] : memref<2x8x128xf32, #tpu.memory_space<vmem>>, vector<1x8x128xf32>
    %36 = vector.shape_cast %35 : vector<1x8x128xf32> to vector<8x128xf32>
    %c1_41 = arith.constant 1 : index
    %c0_42 = arith.constant 0 : index
    %c0_43 = arith.constant 0 : index
    %37 = vector.load %arg14[%c1_41, %c0_42, %c0_43] : memref<2x8x128xf32, #tpu.memory_space<vmem>>, vector<1x8x128xf32>
    %38 = vector.shape_cast %37 : vector<1x8x128xf32> to vector<8x128xf32>
    %c0_i32_44 = arith.constant 0 : i32
    %c8_i32_45 = arith.constant 8 : i32
    %39 = arith.addi %c0_i32_44, %c8_i32_45 : i32
    %c1_i32 = arith.constant 1 : i32
    %40:4 = scf.for %arg15 = %c0_i32_44 to %39 step %c1_i32 iter_args(%arg16 = %32, %arg17 = %34, %arg18 = %36, %arg19 = %38) -> (vector<8x128xf32>, vector<8x128xf32>, vector<8x128xf32>, vector<8x128xf32>)  : i32 {
      %56 = arith.index_cast %arg15 : i32 to index
      %c0_61 = arith.constant 0 : index
      %c0_62 = arith.constant 0 : index
      %57 = vector.load %arg11[%56, %c0_61, %c0_62] : memref<8x8x512xf32, #tpu.memory_space<vmem>>, vector<1x8x512xf32>
      %58 = vector.shape_cast %57 : vector<1x8x512xf32> to vector<8x512xf32>
      %59 = arith.truncf %arg16 : vector<8x128xf32> to vector<8x128xbf16>
      %c0_63 = arith.constant 0 : index
      %c0_64 = arith.constant 0 : index
      %c0_65 = arith.constant 0 : index
      %60 = vector.load %arg6[%c0_63, %c0_64, %c0_65] : memref<2x128x512xbf16, #tpu.memory_space<vmem>>, vector<1x128x512xbf16>
      %61 = vector.shape_cast %60 : vector<1x128x512xbf16> to vector<128x512xbf16>
      %cst_66 = arith.constant dense<0.000000e+00> : vector<8x512xf32>
      %62 = tpu.matmul %59, %61, %cst_66 {dimension_numbers = #tpu.dot_dimension_numbers<[1], [0], [0], [1], [0, 0, 1, 1], [], []>} : vector<8x128xbf16>, vector<128x512xbf16>, vector<8x512xf32> -> vector<8x512xf32>
      %63 = arith.addf %58, %62 : vector<8x512xf32>
      %64 = vector.extract_strided_slice %63 {offsets = [0, 0], sizes = [8, 128], strides = [1, 1]} : vector<8x512xf32> to vector<8x128xf32>
      %65 = arith.negf %64 : vector<8x128xf32>
      %66 = math.exp %65 : vector<8x128xf32>
      %cst_67 = arith.constant 1.000000e+00 : f32
      %67 = vector.broadcast %cst_67 : f32 to vector<8x128xf32>
      %68 = arith.addf %67, %66 : vector<8x128xf32>
      %69 = arith.divf %67, %68 : vector<8x128xf32>
      %70 = vector.extract_strided_slice %63 {offsets = [0, 128], sizes = [8, 128], strides = [1, 1]} : vector<8x512xf32> to vector<8x128xf32>
      %71 = arith.negf %70 : vector<8x128xf32>
      %72 = math.exp %71 : vector<8x128xf32>
      %cst_68 = arith.constant 1.000000e+00 : f32
      %73 = vector.broadcast %cst_68 : f32 to vector<8x128xf32>
      %74 = arith.addf %73, %72 : vector<8x128xf32>
      %75 = arith.divf %73, %74 : vector<8x128xf32>
      %76 = vector.extract_strided_slice %63 {offsets = [0, 256], sizes = [8, 128], strides = [1, 1]} : vector<8x512xf32> to vector<8x128xf32>
      %77 = math.tanh %76 : vector<8x128xf32>
      %78 = vector.extract_strided_slice %63 {offsets = [0, 384], sizes = [8, 128], strides = [1, 1]} : vector<8x512xf32> to vector<8x128xf32>
      %79 = arith.negf %78 : vector<8x128xf32>
      %80 = math.exp %79 : vector<8x128xf32>
      %cst_69 = arith.constant 1.000000e+00 : f32
      %81 = vector.broadcast %cst_69 : f32 to vector<8x128xf32>
      %82 = arith.addf %81, %80 : vector<8x128xf32>
      %83 = arith.divf %81, %82 : vector<8x128xf32>
      %84 = arith.mulf %75, %arg17 : vector<8x128xf32>
      %85 = arith.mulf %69, %77 : vector<8x128xf32>
      %86 = arith.addf %84, %85 : vector<8x128xf32>
      %87 = math.tanh %86 : vector<8x128xf32>
      %88 = arith.mulf %83, %87 : vector<8x128xf32>
      %89 = arith.addi %28, %arg15 : i32
      %90 = vector.broadcast %89 : i32 to vector<8x1xi32>
      %91 = arith.cmpi slt, %90, %27 : vector<8x1xi32>
      %cst_70 = arith.constant 0.000000e+00 : f32
      %92 = vector.shape_cast %91 : vector<8x1xi1> to vector<8x1xi1>
      %93 = vector.broadcast %92 : vector<8x1xi1> to vector<8x128xi1>
      %94 = vector.broadcast %cst_70 : f32 to vector<8x128xf32>
      %95 = arith.select %93, %88, %94 : vector<8x128xi1>, vector<8x128xf32>
      %96 = arith.index_cast %arg15 : i32 to index
      %c0_71 = arith.constant 0 : index
      %c0_72 = arith.constant 0 : index
      %97 = vector.load %arg7[%96, %c0_71, %c0_72] : memref<8x8x128xf32, #tpu.memory_space<vmem>>, vector<1x8x128xf32>
      %98 = vector.shape_cast %97 : vector<1x8x128xf32> to vector<8x128xf32>
      %99 = vector.shape_cast %95 : vector<8x128xf32> to vector<1x8x128xf32>
      tpu.vector_store %arg7[%96, %c0_71, %c0_72], %99 {strides = array<i32>} : memref<8x8x128xf32, #tpu.memory_space<vmem>>, vector<1x8x128xf32>,
      %100 = vector.shape_cast %91 : vector<8x1xi1> to vector<8x1xi1>
      %101 = vector.broadcast %100 : vector<8x1xi1> to vector<8x128xi1>
      %102 = arith.select %101, %88, %arg16 : vector<8x128xi1>, vector<8x128xf32>
      %103 = vector.shape_cast %91 : vector<8x1xi1> to vector<8x1xi1>
      %104 = vector.broadcast %103 : vector<8x1xi1> to vector<8x128xi1>
      %105 = arith.select %104, %86, %arg17 : vector<8x128xi1>, vector<8x128xf32>
      %c7_i32 = arith.constant 7 : i32
      %106 = arith.subi %c7_i32, %arg15 : i32
      %107 = arith.index_cast %106 : i32 to index
      %c0_73 = arith.constant 0 : index
      %c0_74 = arith.constant 0 : index
      %108 = vector.load %arg12[%107, %c0_73, %c0_74] : memref<8x8x512xf32, #tpu.memory_space<vmem>>, vector<1x8x512xf32>
      %109 = vector.shape_cast %108 : vector<1x8x512xf32> to vector<8x512xf32>
      %110 = arith.truncf %arg18 : vector<8x128xf32> to vector<8x128xbf16>
      %c1_75 = arith.constant 1 : index
      %c0_76 = arith.constant 0 : index
      %c0_77 = arith.constant 0 : index
      %111 = vector.load %arg6[%c1_75, %c0_76, %c0_77] : memref<2x128x512xbf16, #tpu.memory_space<vmem>>, vector<1x128x512xbf16>
      %112 = vector.shape_cast %111 : vector<1x128x512xbf16> to vector<128x512xbf16>
      %cst_78 = arith.constant dense<0.000000e+00> : vector<8x512xf32>
      %113 = tpu.matmul %110, %112, %cst_78 {dimension_numbers = #tpu.dot_dimension_numbers<[1], [0], [0], [1], [0, 0, 1, 1], [], []>} : vector<8x128xbf16>, vector<128x512xbf16>, vector<8x512xf32> -> vector<8x512xf32>
      %114 = arith.addf %109, %113 : vector<8x512xf32>
      %115 = vector.extract_strided_slice %114 {offsets = [0, 0], sizes = [8, 128], strides = [1, 1]} : vector<8x512xf32> to vector<8x128xf32>
      %116 = arith.negf %115 : vector<8x128xf32>
      %117 = math.exp %116 : vector<8x128xf32>
      %cst_79 = arith.constant 1.000000e+00 : f32
      %118 = vector.broadcast %cst_79 : f32 to vector<8x128xf32>
      %119 = arith.addf %118, %117 : vector<8x128xf32>
      %120 = arith.divf %118, %119 : vector<8x128xf32>
      %121 = vector.extract_strided_slice %114 {offsets = [0, 128], sizes = [8, 128], strides = [1, 1]} : vector<8x512xf32> to vector<8x128xf32>
      %122 = arith.negf %121 : vector<8x128xf32>
      %123 = math.exp %122 : vector<8x128xf32>
      %cst_80 = arith.constant 1.000000e+00 : f32
      %124 = vector.broadcast %cst_80 : f32 to vector<8x128xf32>
      %125 = arith.addf %124, %123 : vector<8x128xf32>
      %126 = arith.divf %124, %125 : vector<8x128xf32>
      %127 = vector.extract_strided_slice %114 {offsets = [0, 256], sizes = [8, 128], strides = [1, 1]} : vector<8x512xf32> to vector<8x128xf32>
      %128 = math.tanh %127 : vector<8x128xf32>
      %129 = vector.extract_strided_slice %114 {offsets = [0, 384], sizes = [8, 128], strides = [1, 1]} : vector<8x512xf32> to vector<8x128xf32>
      %130 = arith.negf %129 : vector<8x128xf32>
      %131 = math.exp %130 : vector<8x128xf32>
      %cst_81 = arith.constant 1.000000e+00 : f32
      %132 = vector.broadcast %cst_81 : f32 to vector<8x128xf32>
      %133 = arith.addf %132, %131 : vector<8x128xf32>
      %134 = arith.divf %132, %133 : vector<8x128xf32>
      %135 = arith.mulf %126, %arg19 : vector<8x128xf32>
      %136 = arith.mulf %120, %128 : vector<8x128xf32>
      %137 = arith.addf %135, %136 : vector<8x128xf32>
      %138 = math.tanh %137 : vector<8x128xf32>
      %139 = arith.mulf %134, %138 : vector<8x128xf32>
      %140 = arith.addi %30, %106 : i32
      %141 = vector.broadcast %140 : i32 to vector<8x1xi32>
      %142 = arith.cmpi slt, %141, %27 : vector<8x1xi32>
      %cst_82 = arith.constant 0.000000e+00 : f32
      %143 = vector.shape_cast %142 : vector<8x1xi1> to vector<8x1xi1>
      %144 = vector.broadcast %143 : vector<8x1xi1> to vector<8x128xi1>
      %145 = vector.broadcast %cst_82 : f32 to vector<8x128xf32>
      %146 = arith.select %144, %139, %145 : vector<8x128xi1>, vector<8x128xf32>
      %147 = arith.index_cast %106 : i32 to index
      %c0_83 = arith.constant 0 : index
      %c0_84 = arith.constant 0 : index
      %148 = vector.load %arg8[%147, %c0_83, %c0_84] : memref<8x8x128xf32, #tpu.memory_space<vmem>>, vector<1x8x128xf32>
      %149 = vector.shape_cast %148 : vector<1x8x128xf32> to vector<8x128xf32>
      %150 = vector.shape_cast %146 : vector<8x128xf32> to vector<1x8x128xf32>
      tpu.vector_store %arg8[%147, %c0_83, %c0_84], %150 {strides = array<i32>} : memref<8x8x128xf32, #tpu.memory_space<vmem>>, vector<1x8x128xf32>,
      %151 = vector.shape_cast %142 : vector<8x1xi1> to vector<8x1xi1>
      %152 = vector.broadcast %151 : vector<8x1xi1> to vector<8x128xi1>
      %153 = arith.select %152, %139, %arg18 : vector<8x128xi1>, vector<8x128xf32>
      %154 = vector.shape_cast %142 : vector<8x1xi1> to vector<8x1xi1>
      %155 = vector.broadcast %154 : vector<8x1xi1> to vector<8x128xi1>
      %156 = arith.select %155, %137, %arg19 : vector<8x128xi1>, vector<8x128xf32>
      scf.yield %102, %105, %153, %156 : vector<8x128xf32>, vector<8x128xf32>, vector<8x128xf32>, vector<8x128xf32>
    }
    %c8_i32_46 = arith.constant 8 : i32
    %c0_47 = arith.constant 0 : index
    %c0_48 = arith.constant 0 : index
    %c0_49 = arith.constant 0 : index
    %41 = vector.load %arg13[%c0_47, %c0_48, %c0_49] : memref<2x8x128xf32, #tpu.memory_space<vmem>>, vector<1x8x128xf32>
    %42 = vector.shape_cast %41 : vector<1x8x128xf32> to vector<8x128xf32>
    %43 = vector.shape_cast %40#0 : vector<8x128xf32> to vector<1x8x128xf32>
    tpu.vector_store %arg13[%c0_47, %c0_48, %c0_49], %43 {strides = array<i32>} : memref<2x8x128xf32, #tpu.memory_space<vmem>>, vector<1x8x128xf32>,
    %c0_50 = arith.constant 0 : index
    %c0_51 = arith.constant 0 : index
    %c0_52 = arith.constant 0 : index
    %44 = vector.load %arg14[%c0_50, %c0_51, %c0_52] : memref<2x8x128xf32, #tpu.memory_space<vmem>>, vector<1x8x128xf32>
    %45 = vector.shape_cast %44 : vector<1x8x128xf32> to vector<8x128xf32>
    %46 = vector.shape_cast %40#1 : vector<8x128xf32> to vector<1x8x128xf32>
    tpu.vector_store %arg14[%c0_50, %c0_51, %c0_52], %46 {strides = array<i32>} : memref<2x8x128xf32, #tpu.memory_space<vmem>>, vector<1x8x128xf32>,
    %c1_53 = arith.constant 1 : index
    %c0_54 = arith.constant 0 : index
    %c0_55 = arith.constant 0 : index
    %47 = vector.load %arg13[%c1_53, %c0_54, %c0_55] : memref<2x8x128xf32, #tpu.memory_space<vmem>>, vector<1x8x128xf32>
    %48 = vector.shape_cast %47 : vector<1x8x128xf32> to vector<8x128xf32>
    %49 = vector.shape_cast %40#2 : vector<8x128xf32> to vector<1x8x128xf32>
    tpu.vector_store %arg13[%c1_53, %c0_54, %c0_55], %49 {strides = array<i32>} : memref<2x8x128xf32, #tpu.memory_space<vmem>>, vector<1x8x128xf32>,
    %c1_56 = arith.constant 1 : index
    %c0_57 = arith.constant 0 : index
    %c0_58 = arith.constant 0 : index
    %50 = vector.load %arg14[%c1_56, %c0_57, %c0_58] : memref<2x8x128xf32, #tpu.memory_space<vmem>>, vector<1x8x128xf32>
    %51 = vector.shape_cast %50 : vector<1x8x128xf32> to vector<8x128xf32>
    %52 = vector.shape_cast %40#3 : vector<8x128xf32> to vector<1x8x128xf32>
    tpu.vector_store %arg14[%c1_56, %c0_57, %c0_58], %52 {strides = array<i32>} : memref<2x8x128xf32, #tpu.memory_space<vmem>>, vector<1x8x128xf32>,
    %c0_i32_59 = arith.constant 0 : i32
    %53 = arith.cmpi eq, %arg0, %c0_i32_59 : i32
    %54 = arith.extui %53 : i1 to i32
    %c0_i32_60 = arith.constant 0 : i32
    %55 = arith.cmpi ne, %54, %c0_i32_60 : i32
    scf.if %55 {
      %c0_61 = arith.constant 0 : index
      %c0_62 = arith.constant 0 : index
      %c0_63 = arith.constant 0 : index
      %56 = vector.load %arg9[%c0_61, %c0_62, %c0_63] : memref<2x8x128xf32, #tpu.memory_space<vmem>>, vector<1x8x128xf32>
      %57 = vector.shape_cast %56 : vector<1x8x128xf32> to vector<8x128xf32>
      %58 = vector.shape_cast %40#0 : vector<8x128xf32> to vector<1x8x128xf32>
      tpu.vector_store %arg9[%c0_61, %c0_62, %c0_63], %58 {strides = array<i32>} : memref<2x8x128xf32, #tpu.memory_space<vmem>>, vector<1x8x128xf32>,
      %c1_64 = arith.constant 1 : index
      %c0_65 = arith.constant 0 : index
      %c0_66 = arith.constant 0 : index
      %59 = vector.load %arg9[%c1_64, %c0_65, %c0_66] : memref<2x8x128xf32, #tpu.memory_space<vmem>>, vector<1x8x128xf32>
      %60 = vector.shape_cast %59 : vector<1x8x128xf32> to vector<8x128xf32>
      %61 = vector.shape_cast %40#2 : vector<8x128xf32> to vector<1x8x128xf32>
      tpu.vector_store %arg9[%c1_64, %c0_65, %c0_66], %61 {strides = array<i32>} : memref<2x8x128xf32, #tpu.memory_space<vmem>>, vector<1x8x128xf32>,
      %c0_67 = arith.constant 0 : index
      %c0_68 = arith.constant 0 : index
      %c0_69 = arith.constant 0 : index
      %62 = vector.load %arg10[%c0_67, %c0_68, %c0_69] : memref<2x8x128xf32, #tpu.memory_space<vmem>>, vector<1x8x128xf32>
      %63 = vector.shape_cast %62 : vector<1x8x128xf32> to vector<8x128xf32>
      %64 = vector.shape_cast %40#1 : vector<8x128xf32> to vector<1x8x128xf32>
      tpu.vector_store %arg10[%c0_67, %c0_68, %c0_69], %64 {strides = array<i32>} : memref<2x8x128xf32, #tpu.memory_space<vmem>>, vector<1x8x128xf32>,
      %c1_70 = arith.constant 1 : index
      %c0_71 = arith.constant 0 : index
      %c0_72 = arith.constant 0 : index
      %65 = vector.load %arg10[%c1_70, %c0_71, %c0_72] : memref<2x8x128xf32, #tpu.memory_space<vmem>>, vector<1x8x128xf32>
      %66 = vector.shape_cast %65 : vector<1x8x128xf32> to vector<8x128xf32>
      %67 = vector.shape_cast %40#3 : vector<8x128xf32> to vector<1x8x128xf32>
      tpu.vector_store %arg10[%c1_70, %c0_71, %c0_72], %67 {strides = array<i32>} : memref<2x8x128xf32, #tpu.memory_space<vmem>>, vector<1x8x128xf32>,
    } else {
    }
    return
  }
  func.func @transform_0(%arg0: i32) -> (i32, i32, i32, i32) {
    %c0_i32 = arith.constant 0 : i32
    %c0_i32_0 = arith.constant 0 : i32
    %c0_i32_1 = arith.constant 0 : i32
    %c0_i32_2 = arith.constant 0 : i32
    return %arg0, %c0_i32, %c0_i32_0, %c0_i32_1 : i32, i32, i32, i32
  }
  func.func @transform_1(%arg0: i32) -> (i32, i32, i32, i32) {
    %c0_i32 = arith.constant 0 : i32
    %0 = arith.subi %c0_i32, %arg0 : i32
    %c0_i32_0 = arith.constant 0 : i32
    %c0_i32_1 = arith.constant 0 : i32
    %c0_i32_2 = arith.constant 0 : i32
    %c0_i32_3 = arith.constant 0 : i32
    return %0, %c0_i32_0, %c0_i32_1, %c0_i32_2 : i32, i32, i32, i32
  }
  func.func @transform_2(%arg0: i32) -> (i32, i32) {
    %c0_i32 = arith.constant 0 : i32
    %c0_i32_0 = arith.constant 0 : i32
    %c0_i32_1 = arith.constant 0 : i32
    return %c0_i32, %c0_i32_0 : i32, i32
  }
  func.func @transform_3(%arg0: i32) -> (i32, i32, i32) {
    %c0_i32 = arith.constant 0 : i32
    %c0_i32_0 = arith.constant 0 : i32
    %c0_i32_1 = arith.constant 0 : i32
    %c0_i32_2 = arith.constant 0 : i32
    return %c0_i32, %c0_i32_0, %c0_i32_1 : i32, i32, i32
  }
  func.func @transform_4(%arg0: i32) -> (i32, i32, i32) {
    %c0_i32 = arith.constant 0 : i32
    %c0_i32_0 = arith.constant 0 : i32
    %c0_i32_1 = arith.constant 0 : i32
    %c0_i32_2 = arith.constant 0 : i32
    return %c0_i32, %c0_i32_0, %c0_i32_1 : i32, i32, i32
  }
  func.func @transform_5(%arg0: i32) -> (i32, i32, i32) {
    %c0_i32 = arith.constant 0 : i32
    %c0_i32_0 = arith.constant 0 : i32
    %c0_i32_1 = arith.constant 0 : i32
    %c0_i32_2 = arith.constant 0 : i32
    return %c0_i32, %c0_i32_0, %c0_i32_1 : i32, i32, i32
  }
  func.func @transform_6(%arg0: i32) -> (i32, i32, i32) {
    %c0_i32 = arith.constant 0 : i32
    %c0_i32_0 = arith.constant 0 : i32
    %c0_i32_1 = arith.constant 0 : i32
    return %arg0, %c0_i32, %c0_i32_0 : i32, i32, i32
  }
  func.func @transform_7(%arg0: i32) -> (i32, i32, i32) {
    %c0_i32 = arith.constant 0 : i32
    %0 = arith.subi %c0_i32, %arg0 : i32
    %c0_i32_0 = arith.constant 0 : i32
    %c0_i32_1 = arith.constant 0 : i32
    %c0_i32_2 = arith.constant 0 : i32
    return %0, %c0_i32_0, %c0_i32_1 : i32, i32, i32
  }
  func.func @transform_8(%arg0: i32) -> (i32, i32, i32) {
    %c0_i32 = arith.constant 0 : i32
    %c0_i32_0 = arith.constant 0 : i32
    %c0_i32_1 = arith.constant 0 : i32
    %c0_i32_2 = arith.constant 0 : i32
    return %c0_i32, %c0_i32_0, %c0_i32_1 : i32, i32, i32
  }
  func.func @transform_9(%arg0: i32) -> (i32, i32, i32) {
    %c0_i32 = arith.constant 0 : i32
    %c0_i32_0 = arith.constant 0 : i32
    %c0_i32_1 = arith.constant 0 : i32
    %c0_i32_2 = arith.constant 0 : i32
    return %c0_i32, %c0_i32_0, %c0_i32_1 : i32, i32, i32
  }
}

</mosaic_0001>

<bundles_post_ra>
// kernel: tpu_custom_call.1
= control target key start
LH: loop header
LB: loop body
LE: loop exit
PB: predicated region body
PF: predicated region fallthrough
CT: control target
= control target key end

     0   :  { %15 = vsyncpa [#allocation7], 0  ;;  %s2648_s0 = inlined_call_operand.hbm [shape: bf16[8,2,8,16], index: 0, kind: input, shape index: {}]   ;;  %s2649_s1 = inlined_call_operand.hbm [shape: bf16[8,2,8,16], index: 1, kind: input, shape index: {}]   ;;  %s2650_s2 = inlined_call_operand.vmem [shape: s32[8,1], index: 2, kind: input, shape index: {}]   ;;  %s2651_s3 = inlined_call_operand.hbm [shape: bf16[2,16,512], index: 3, kind: input, shape index: {}]   ;;  %s2652_s4 = inlined_call_operand.vmem [shape: f32[2,1,512], index: 4, kind: input, shape index: {}]   ;;  %s2653_s5 = inlined_call_operand.hbm [shape: bf16[2,128,512], index: 5, kind: input, shape index: {}]   ;;  %s2654_s6 = inlined_call_operand.hbm [shape: f32[8,8,128], index: 6, kind: output, shape index: {0}]   ;;  %s2655_s7 = inlined_call_operand.hbm [shape: f32[8,8,128], index: 7, kind: output, shape index: {1}]   ;;  %s2656_s8 = inlined_call_operand.hbm [shape: f32[2,8,128], index: 8, kind: output, shape index: {2}]   ;;  %s2657_s9 = inlined_call_operand.hbm [shape: f32[2,8,128], index: 9, kind: output, shape index: {3}]  }
   0x1   :  { %16 = vsyncpa [#allocation10], 0 }
   0x2   :  { %17 = vsyncpa [#allocation13], 0 }
   0x3   :  { %18 = vsyncpa [#allocation8], 0 }
   0x4   :  { %19 = vsyncpa [#allocation16], 0 }
   0x5   :  { %20 = vsyncpa [#allocation19], 0  ;;  %s43_s11 = sshll.u32 %s2649_s1, 4  ;;  %s2296_s12 = smov [#allocation9]   ;;  %s44_s11 = int_to_ptr.hbm [resolvable:$true] %s43_s11 }
   0x6   :  { %s45_s13 = sshll.u32 %s2296_s12, 4  ;;  %s25_s16 = sshll.u32 %s2648_s0, 4  ;;  %s46_s13 = int_to_ptr.vmem [resolvable:$true] %s45_s13  ;;  %s26_s16 = int_to_ptr.hbm [resolvable:$true] %s25_s16 }
   0x7   :  { %s2297_s17 = smov 64   ;;  %s2298_s18 = smov 4  }
   0x8   :  { %51 = dma.hbm_to_vmem [thread:$0]  %s44_s11, 1024, %s46_s13, [#allocation10], %s2297_s17, %s2297_s17, %s2298_s18  }
   0x9   :  { %s2299_s19 = smov [#allocation6]   ;;  %s58_s23 = sshll.u32 %s2651_s3, 4  ;;  %s59_s23 = int_to_ptr.hbm [resolvable:$true] %s58_s23 }
   0xa   :  { %s27_s20 = sshll.u32 %s2299_s19, 4  ;;  %s2300_s1 = smov [#allocation11]   ;;  %s28_s20 = int_to_ptr.vmem [resolvable:$true] %s27_s20 }
   0xb   :  { %33 = dma.hbm_to_vmem [thread:$0]  %s26_s16, 1024, %s28_s20, [#allocation7], %s2297_s17, %s2297_s17, %s2298_s18  }
   0xc   :  { %s60_s24 = sshll.u32 %s2300_s1, 4  ;;  %s73_s0 = sshll.u32 %s2653_s5, 4  ;;  %s61_s24 = int_to_ptr.vmem [resolvable:$true] %s60_s24  ;;  %s74_s0 = int_to_ptr.hbm [resolvable:$true] %s73_s0 }
   0xd   :  { %s2301_s27 = smov 256   ;;  %s2302_s28 = smov 16  }
   0xe   :  { %66 = dma.hbm_to_vmem [thread:$0]  %s59_s23, 1024, %s61_s24, [#allocation10], %s2301_s27, %s2301_s27, %s2302_s28  }
   0xf   :  { %s2303_s29 = smov [#allocation12]  }
  0x10   :  { %s75_s30 = sshll.u32 %s2303_s29, 4  ;;  %s76_s30 = int_to_ptr.vmem [resolvable:$true] %s75_s30 }
  0x11   :  { %81 = dma.hbm_to_vmem [thread:$0]  %s74_s0, 8192, %s76_s30, [#allocation13], %s2301_s27, %s2301_s27, %s2302_s28  }
  0x12   :  { %2264 = dma.done.wait [#allocation7], 1024  }
  0x13   :  { %2265 = vsyncadd [#allocation7], 4294966272 }
  0x14   :  { %2266 = dma.done.wait [#allocation10], 2048  }
  0x15   :  { %2267 = vsyncadd [#allocation10], 4294965248 }
  0x16   :  { %2268 = dma.done.wait [#allocation13], 8192  }
  0x17   :  { %2269 = vsyncadd [#allocation13], 4294959104  ;;  %v2376_v0 = vld [vmem:[%s2650_s2] sm:$0xff]  ;;  %v1813_v2 = vld [vmem:[#allocation11 + $0xc] sm:$0xf0]  ;;  %vm143_vm0 = vcmask 130048  }
  0x18   :  { %v1480_v1 = vld [vmem:[#allocation11] sm:$0xf]  ;;  %v1811_v4 = vld [vmem:[#allocation11 + $0x4] sm:$0xf]  ;;  %v1482_v5 = vld [vmem:[#allocation11 + $0x10] sm:$0xf0] }
  0x19   :  { %v1481_v3 = vor.u32 %v1813_v2, %v1480_v1  ;;  %v1488_v6 = vld [vmem:[#allocation11 + $0x8] sm:$0xf]  ;;  %v1485_v7 = vor.u32 %v1811_v4, %v1482_v5  ;;  %v1814_v8 = vld [vmem:[#allocation11 + $0x14] sm:$0xf0]  ;;  %v1812_v9 = vld [vmem:[#allocation11 + $0xc] sm:$0xf] }
  0x1a   :  { %v1490_v10 = vld [vmem:[#allocation11 + $0x18] sm:$0xf0]  ;;  %v1489_v11 = vor.u32 %v1814_v8, %v1488_v6  ;;  %v1886_v13 = vld [vmem:[#allocation6] sm:$0xff]   ;;  %v1949_v14 = vld [vmem:[#allocation6 + $0x8] sm:$0xff]  }
  0x1b   :  { %249 = vmatpush.bf16.msra.mxu0 %v1481_v3  ;;  %v1493_v12 = vor.u32 %v1812_v9, %v1490_v10  ;;  %v1521_v15 = vld [vmem:[#allocation11 + $0x28] sm:$0xf]  ;;  %278 = vmatpush.bf16.msra.mxu1 %v1485_v7  ;;  %v1887_v16 = vunpack.c.l.bf16 %v1886_v13  ;;  %v1888_v17 = vunpack.c.h.bf16 %v1886_v13  ;;  %v1891_v18 = vunpack.c.l.bf16 %v1949_v14  ;;  %v1818_v20 = vld [vmem:[#allocation11 + $0x34] sm:$0xf0]  ;;  %v1816_v21 = vld [vmem:[#allocation11 + $0x2c] sm:$0xf] }
  0x1c   :  { %v1892_v19 = vunpack.c.h.bf16 %v1949_v14  ;;  %v1523_v22 = vld [vmem:[#allocation11 + $0x38] sm:$0xf0]  ;;  %307 = vmatpush.bf16.msra.mxu2 %v1489_v11  ;;  %v1522_v23 = vor.u32 %v1818_v20, %v1521_v15  ;;  %v1513_v25 = vld [vmem:[#allocation11 + $0x20] sm:$0xf]  ;;  %v1817_v26 = vld [vmem:[#allocation11 + $0x2c] sm:$0xf0] }
  0x1d   :  { %336 = vmatpush.bf16.msra.mxu3 %v1493_v12  ;;  %v1526_v24 = vor.u32 %v1816_v21, %v1523_v22  ;;  %v1815_v27 = vld [vmem:[#allocation11 + $0x24] sm:$0xf]  ;;  %v144_v28 = vsel %vm143_vm0, %v1887_v16, -inf  ;;  %v145_v29 = vsel %vm143_vm0, %v1888_v17, -inf  ;;  %v147_v30 = vsel %vm143_vm0, %v1891_v18, -inf  ;;  %v1950_v36 = vld [vmem:[#allocation6 + $0x10] sm:$0xff]  }
  0x1e   :  { %v148_v31 = vsel %vm143_vm0, %v1892_v19, -inf  ;;  %v1515_v32 = vld [vmem:[#allocation11 + $0x30] sm:$0xf0]  ;;  %v146_v33 = vmax.f32 %v144_v28, %v145_v29  ;;  %v1514_v35 = vor.u32 %v1817_v26, %v1513_v25  ;;  %v1951_v37 = vld [vmem:[#allocation6 + $0x18] sm:$0xff]   ;;  %v1895_v39 = vunpack.c.l.bf16 %v1950_v36  ;;  %v1952_v56 = vld [vmem:[#allocation6 + $0x20] sm:$0xff]  }
  0x1f   :  { %v149_v34 = vmax.f32 %v147_v30, %v148_v31  ;;  %v1518_v38 = vor.u32 %v1815_v27, %v1515_v32  ;;  %v1896_v40 = vunpack.c.h.bf16 %v1950_v36  ;;  %v1899_v41 = vunpack.c.l.bf16 %v1951_v37  ;;  %v1953_v57 = vld [vmem:[#allocation6 + $0x28] sm:$0xff]   ;;  %v1954_v10 = vld [vmem:[#allocation6 + $0x30] sm:$0xff]   ;;  %v1955_v11 = vld [vmem:[#allocation6 + $0x38] sm:$0xff]  }
  0x20   :  { %587 = vmatpush.bf16.msrb.mxu2 %v1522_v23  ;;  %v168_v42 = vpack.c.bf16 %v146_v33, %v146_v33  ;;  %529 = vmatpush.bf16.msrb.mxu0 %v1514_v35  ;;  %v1900_v44 = vunpack.c.h.bf16 %v1951_v37  ;;  %v150_v47 = vsel %vm143_vm0, %v1895_v39, -inf  ;;  %v1903_v60 = vunpack.c.l.bf16 %v1952_v56  ;;  %v1918_v27 = vld [vmem:[#allocation9] sm:$0xff]   ;;  %v1956_v28 = vld [vmem:[#allocation9 + $0x8] sm:$0xff]  }
  0x21   :  { %616 = vmatpush.bf16.msrb.mxu3 %v1526_v24  ;;  %v169_v43 = vpack.c.bf16 %v149_v34, %v149_v34  ;;  %558 = vmatpush.bf16.msrb.mxu1 %v1518_v38  ;;  %v151_v48 = vsel %vm143_vm0, %v1896_v40, -inf  ;;  %v153_v49 = vsel %vm143_vm0, %v1899_v41, -inf  ;;  %v1904_v61 = vunpack.c.h.bf16 %v1952_v56 }
  0x22   :  { %v198_v45 = vunpack.c.l.b16 %v168_v42  ;;  %v154_v50 = vsel %vm143_vm0, %v1900_v44, -inf  ;;  %v152_v52 = vmax.f32 %v150_v47, %v151_v48  ;;  %v1907_v62 = vunpack.c.l.bf16 %v1953_v57  ;;  %v1957_v44 = vld [vmem:[#allocation9 + $0x10] sm:$0xff]  }
  0x23   :  { %v199_v46 = vunpack.c.l.b16 %v169_v43  ;;  %v155_v53 = vmax.f32 %v153_v49, %v154_v50  ;;  %v1908_v63 = vunpack.c.h.bf16 %v1953_v57  ;;  %v156_v2 = vsel %vm143_vm0, %v1903_v60, -inf }
  0x24   :  { %v170_v54 = vpack.c.bf16 %v152_v52, %v152_v52  ;;  %v157_v3 = vsel %vm143_vm0, %v1904_v61, -inf  ;;  %v159_v4 = vsel %vm143_vm0, %v1907_v62, -inf  ;;  %v1911_v14 = vunpack.c.l.bf16 %v1954_v10  ;;  %v1959_v61 = vld [vmem:[#allocation9 + $0x20] sm:$0xff]   ;;  %v1960_v62 = vld [vmem:[#allocation9 + $0x28] sm:$0xff]  }
  0x25   :  { %v206_v51 = vpack.c.b16 %v199_v46, %v198_v45  ;;  %v171_v55 = vpack.c.bf16 %v155_v53, %v155_v53  ;;  %v160_v5 = vsel %vm143_vm0, %v1908_v63, -inf  ;;  %v158_v6 = vmax.f32 %v156_v2, %v157_v3  ;;  %v1958_v45 = vld [vmem:[#allocation9 + $0x18] sm:$0xff]  }
  0x26   :  { %v200_v58 = vunpack.c.l.b16 %v170_v54  ;;  %v161_v7 = vmax.f32 %v159_v4, %v160_v5  ;;  %v1912_v15 = vunpack.c.h.bf16 %v1954_v10  ;;  %v1915_v16 = vunpack.c.l.bf16 %v1955_v11 }
  0x27   :  { %1494 = vmatmul.msk.bf16.vlgmr.msra.gmra.mxu0 %vm143_vm0, %v206_v51  ;;  %1498 = vmatmul.msk.bf16.vlgmr.msra.gmra.mxu1 %vm143_vm0, %v206_v51  ;;  %v201_v59 = vunpack.c.l.b16 %v171_v55  ;;  %v172_v8 = vpack.c.bf16 %v158_v6, %v158_v6  ;;  %v1916_v17 = vunpack.c.h.bf16 %v1955_v11  ;;  %v162_v19 = vsel %vm143_vm0, %v1911_v14, -inf }
  0x28   :  { %1502 = vmatmul.msk.bf16.vlgmr.msra.gmra.mxu2 %vm143_vm0, %v206_v51  ;;  %1506 = vmatmul.msk.bf16.vlgmr.msra.gmra.mxu3 %vm143_vm0, %v206_v51  ;;  %v173_v9 = vpack.c.bf16 %v161_v7, %v161_v7  ;;  %v163_v20 = vsel %vm143_vm0, %v1912_v15, -inf  ;;  %v165_v21 = vsel %vm143_vm0, %v1915_v16, -inf  ;;  %v1919_v31 = vunpack.c.l.bf16 %v1918_v27  ;;  %v1961_v15 = vld [vmem:[#allocation9 + $0x30] sm:$0xff]   ;;  %v1962_v16 = vld [vmem:[#allocation9 + $0x38] sm:$0xff]  }
  0x29   :  { %v207_v1 = vpack.c.b16 %v201_v59, %v200_v58  ;;  %v202_v12 = vunpack.c.l.b16 %v172_v8  ;;  %v166_v22 = vsel %vm143_vm0, %v1916_v17, -inf  ;;  %v164_v23 = vmax.f32 %v162_v19, %v163_v20 }
  0x2a   :  { %v203_v13 = vunpack.c.l.b16 %v173_v9  ;;  %v167_v24 = vmax.f32 %v165_v21, %v166_v22  ;;  %v1920_v32 = vunpack.c.h.bf16 %v1918_v27  ;;  %v1923_v33 = vunpack.c.l.bf16 %v1956_v28 }
  0x2b   :  { %v174_v25 = vpack.c.bf16 %v164_v23, %v164_v23  ;;  %v1924_v34 = vunpack.c.h.bf16 %v1956_v28  ;;  %v422_v36 = vsel %vm143_vm0, %v1919_v31, -inf  ;;  %v1927_v48 = vunpack.c.l.bf16 %v1957_v44 }
  0x2c   :  { %v208_v18 = vpack.c.b16 %v203_v13, %v202_v12  ;;  %v175_v26 = vpack.c.bf16 %v167_v24, %v167_v24  ;;  %v423_v37 = vsel %vm143_vm0, %v1920_v32, -inf  ;;  %v425_v38 = vsel %vm143_vm0, %v1923_v33, -inf }
  0x2d   :  { %v204_v29 = vunpack.c.l.b16 %v174_v25  ;;  %v426_v39 = vsel %vm143_vm0, %v1924_v34, -inf  ;;  %v424_v40 = vmax.f32 %v422_v36, %v423_v37  ;;  %v1928_v49 = vunpack.c.h.bf16 %v1957_v44 }
  0x2e   :  { %v205_v30 = vunpack.c.l.b16 %v175_v26  ;;  %v427_v41 = vmax.f32 %v425_v38, %v426_v39  ;;  %v1931_v50 = vunpack.c.l.bf16 %v1958_v45  ;;  %v1932_v51 = vunpack.c.h.bf16 %v1958_v45 }
  0x2f   :  { %v446_v42 = vpack.c.bf16 %v424_v40, %v424_v40  ;;  %v428_v53 = vsel %vm143_vm0, %v1927_v48, -inf  ;;  %v429_v54 = vsel %vm143_vm0, %v1928_v49, -inf  ;;  %v1935_v2 = vunpack.c.l.bf16 %v1959_v61 }
  0x30   :  { %v209_v35 = vpack.c.b16 %v205_v30, %v204_v29  ;;  %v447_v43 = vpack.c.bf16 %v427_v41, %v427_v41  ;;  %v431_v55 = vsel %vm143_vm0, %v1931_v50, -inf  ;;  %v432_v56 = vsel %vm143_vm0, %v1932_v51, -inf }
  0x31   :  { %v478_v46 = vunpack.c.l.b16 %v446_v42  ;;  %v430_v57 = vmax.f32 %v428_v53, %v429_v54  ;;  %v433_v58 = vmax.f32 %v431_v55, %v432_v56  ;;  %v1936_v3 = vunpack.c.h.bf16 %v1959_v61 }
  0x32   :  { %v479_v47 = vunpack.c.l.b16 %v447_v43  ;;  %v1939_v4 = vunpack.c.l.bf16 %v1960_v62  ;;  %v1940_v5 = vunpack.c.h.bf16 %v1960_v62  ;;  %v434_v7 = vsel %vm143_vm0, %v1935_v2, -inf }
  0x33   :  { %v448_v59 = vpack.c.bf16 %v430_v57, %v430_v57  ;;  %v449_v60 = vpack.c.bf16 %v433_v58, %v433_v58  ;;  %v435_v8 = vsel %vm143_vm0, %v1936_v3, -inf  ;;  %v1943_v19 = vunpack.c.l.bf16 %v1961_v15 }
  0x34   :  { %v486_v52 = vpack.c.b16 %v479_v47, %v478_v46  ;;  %v437_v9 = vsel %vm143_vm0, %v1939_v4, -inf  ;;  %v438_v10 = vsel %vm143_vm0, %v1940_v5, -inf  ;;  %v436_v11 = vmax.f32 %v434_v7, %v435_v8 }
  0x35   :  { %v480_v63 = vunpack.c.l.b16 %v448_v59  ;;  %v439_v12 = vmax.f32 %v437_v9, %v438_v10  ;;  %v1944_v20 = vunpack.c.h.bf16 %v1961_v15  ;;  %v1947_v21 = vunpack.c.l.bf16 %v1962_v16 }
  0x36   :  { %v450_v13 = vpack.c.bf16 %v436_v11, %v436_v11  ;;  %v1948_v22 = vunpack.c.h.bf16 %v1962_v16  ;;  %v440_v24 = vsel %vm143_vm0, %v1943_v19, -inf }
  0x37   :  { %1495 = vmatmul.msk.bf16.gmra.mxu0 %vm143_vm0, %v207_v1  ;;  %1499 = vmatmul.msk.bf16.gmra.mxu1 %vm143_vm0, %v207_v1  ;;  %v451_v14 = vpack.c.bf16 %v439_v12, %v439_v12  ;;  %v441_v25 = vsel %vm143_vm0, %v1944_v20, -inf  ;;  %v443_v26 = vsel %vm143_vm0, %v1947_v21, -inf }
  0x38   :  { %1503 = vmatmul.msk.bf16.gmra.mxu2 %vm143_vm0, %v207_v1  ;;  %1507 = vmatmul.msk.bf16.gmra.mxu3 %vm143_vm0, %v207_v1  ;;  %v481_v1 = vunpack.c.l.b16 %v449_v60  ;;  %v482_v17 = vunpack.c.l.b16 %v450_v13  ;;  %v444_v27 = vsel %vm143_vm0, %v1948_v22, -inf  ;;  %v442_v28 = vmax.f32 %v440_v24, %v441_v25 }
  0x39   :  { %v445_v29 = vmax.f32 %v443_v26, %v444_v27 }
  0x3a   :  { %v487_v6 = vpack.c.b16 %v481_v1, %v480_v63  ;;  %v452_v30 = vpack.c.bf16 %v442_v28, %v442_v28 }
  0x3b   :  { %v453_v31 = vpack.c.bf16 %v445_v29, %v445_v29 }
  0x3c   :  { %v484_v32 = vunpack.c.l.b16 %v452_v30 }
  0x3d   :  { %v485_v33 = vunpack.c.l.b16 %v453_v31 }
  0x3f   :  { %v489_v34 = vpack.c.b16 %v485_v33, %v484_v32 }
  0x47   :  { %1496 = vmatmul.msk.bf16.gmra.mxu0 %vm143_vm0, %v208_v18  ;;  %1500 = vmatmul.msk.bf16.gmra.mxu1 %vm143_vm0, %v208_v18 }
  0x48   :  { %1504 = vmatmul.msk.bf16.gmra.mxu2 %vm143_vm0, %v208_v18  ;;  %1508 = vmatmul.msk.bf16.gmra.mxu3 %vm143_vm0, %v208_v18  ;;  %v483_v18 = vunpack.c.l.b16 %v451_v14 }
  0x4a   :  { %v488_v23 = vpack.c.b16 %v483_v18, %v482_v17 }
  0x57   :  { %1497 = vmatmul.msk.bf16.gmra.mxu0 %vm143_vm0, %v209_v35  ;;  %1501 = vmatmul.msk.bf16.gmra.mxu1 %vm143_vm0, %v209_v35 }
  0x58   :  { %1505 = vmatmul.msk.bf16.gmra.mxu2 %vm143_vm0, %v209_v35  ;;  %1509 = vmatmul.msk.bf16.gmra.mxu3 %vm143_vm0, %v209_v35  ;;  %v180_v35 = vld [vmem:[%s2652_s4] sm:$0xf] }
  0x59   :  { %v2445_v36 = vperm.slane %v180_v35, 0  ;;  %v2447_v37 = vperm.slane %v180_v35, 1  ;;  %v2451_v42 = vperm.slane %v180_v35, 2  ;;  %v2453_v43 = vperm.slane %v180_v35, 3 }
  0x67   :  { %1527 = vmatmul.msk.bf16.vlgmr.msrb.gmra.mxu0 %vm143_vm0, %v486_v52  ;;  %1531 = vmatmul.msk.bf16.vlgmr.msrb.gmra.mxu1 %vm143_vm0, %v486_v52 }
  0x68   :  { %1535 = vmatmul.msk.bf16.vlgmr.msrb.gmra.mxu2 %vm143_vm0, %v486_v52  ;;  %1539 = vmatmul.msk.bf16.vlgmr.msrb.gmra.mxu3 %vm143_vm0, %v486_v52 }
  0x77   :  { %1528 = vmatmul.msk.bf16.gmra.mxu0 %vm143_vm0, %v487_v6  ;;  %1532 = vmatmul.msk.bf16.gmra.mxu1 %vm143_vm0, %v487_v6 }
  0x78   :  { %1536 = vmatmul.msk.bf16.gmra.mxu2 %vm143_vm0, %v487_v6  ;;  %1540 = vmatmul.msk.bf16.gmra.mxu3 %vm143_vm0, %v487_v6 }
  0x87   :  { %1529 = vmatmul.msk.bf16.gmra.mxu0 %vm143_vm0, %v488_v23  ;;  %1533 = vmatmul.msk.bf16.gmra.mxu1 %vm143_vm0, %v488_v23 }
  0x88   :  { %1537 = vmatmul.msk.bf16.gmra.mxu2 %vm143_vm0, %v488_v23  ;;  %1541 = vmatmul.msk.bf16.gmra.mxu3 %vm143_vm0, %v488_v23 }
  0x97   :  { %1530 = vmatmul.msk.bf16.gmra.mxu0 %vm143_vm0, %v489_v34  ;;  %1534 = vmatmul.msk.bf16.gmra.mxu1 %vm143_vm0, %v489_v34 }
  0x98   :  { %1538 = vmatmul.msk.bf16.gmra.mxu2 %vm143_vm0, %v489_v34  ;;  %1542 = vmatmul.msk.bf16.gmra.mxu3 %vm143_vm0, %v489_v34 }
  0xa4   :  { %v251_v38 = vpop.f32.mrf.mxu0  ;;  %v280_v39 = vpop.f32.mrf.mxu1 }
  0xa5   :  { %v252_v40 = vadd.f32 %v251_v38, %v2445_v36  ;;  %v281_v41 = vadd.f32 %v280_v39, %v2447_v37  ;;  %v1510_v39 = vld [vmem:[%s2652_s4 + $0x4] sm:$0xf]  ;;  %s2536_s4 = smov 0  }
  0xa7   :  { %358 = vst [vmem:[#allocation2] sm:$0xff] %v252_v40  ;;  %v2486_v40 = vperm.slane %v1510_v39, 0 }
  0xa8   :  { %359 = vst [vmem:[#allocation2 + $0x8] sm:$0xff] %v281_v41  ;;  %v2488_v41 = vperm.slane %v1510_v39, 1 }
  0xab   :  { %v309_v44 = vpop.f32.mrf.mxu2  ;;  %v338_v45 = vpop.f32.mrf.mxu3 }
  0xac   :  { %v310_v46 = vadd.f32 %v309_v44, %v2451_v42  ;;  %v339_v47 = vadd.f32 %v338_v45, %v2453_v43  ;;  %v253_v48 = vpop.f32.mrf.mxu0  ;;  %v282_v49 = vpop.f32.mrf.mxu1 }
  0xad   :  { %v254_v50 = vadd.f32 %v253_v48, %v2445_v36  ;;  %v283_v51 = vadd.f32 %v282_v49, %v2447_v37 }
  0xae   :  { %360 = vst [vmem:[#allocation2 + $0x10] sm:$0xff] %v310_v46 }
  0xaf   :  { %361 = vst [vmem:[#allocation2 + $0x18] sm:$0xff] %v339_v47 }
  0xb0   :  { %362 = vst [vmem:[#allocation2 + $0x20] sm:$0xff] %v254_v50  ;;  %v2494_v50 = vperm.slane %v1510_v39, 2 }
  0xb1   :  { %363 = vst [vmem:[#allocation2 + $0x28] sm:$0xff] %v283_v51  ;;  %v2496_v51 = vperm.slane %v1510_v39, 3 }
  0xb3   :  { %v311_v52 = vpop.f32.mrf.mxu2  ;;  %v340_v53 = vpop.f32.mrf.mxu3 }
  0xb4   :  { %v312_v54 = vadd.f32 %v311_v52, %v2451_v42  ;;  %v341_v55 = vadd.f32 %v340_v53, %v2453_v43  ;;  %v256_v56 = vpop.f32.mrf.mxu0  ;;  %v285_v57 = vpop.f32.mrf.mxu1 }
  0xb5   :  { %v257_v58 = vadd.f32 %v256_v56, %v2445_v36  ;;  %v286_v59 = vadd.f32 %v285_v57, %v2447_v37 }
  0xb6   :  { %364 = vst [vmem:[#allocation2 + $0x30] sm:$0xff] %v312_v54 }
  0xb7   :  { %365 = vst [vmem:[#allocation2 + $0x38] sm:$0xff] %v341_v55 }
  0xb8   :  { %366 = vst [vmem:[#allocation2 + $0x40] sm:$0xff] %v257_v58 }
  0xb9   :  { %367 = vst [vmem:[#allocation2 + $0x48] sm:$0xff] %v286_v59 }
  0xbb   :  { %v314_v60 = vpop.f32.mrf.mxu2  ;;  %v343_v61 = vpop.f32.mrf.mxu3 }
  0xbc   :  { %v315_v62 = vadd.f32 %v314_v60, %v2451_v42  ;;  %v344_v63 = vadd.f32 %v343_v61, %v2453_v43  ;;  %v258_v1 = vpop.f32.mrf.mxu0  ;;  %v287_v2 = vpop.f32.mrf.mxu1 }
  0xbd   :  { %v259_v3 = vadd.f32 %v258_v1, %v2445_v36  ;;  %v288_v4 = vadd.f32 %v287_v2, %v2447_v37 }
  0xbe   :  { %368 = vst [vmem:[#allocation2 + $0x50] sm:$0xff] %v315_v62 }
  0xbf   :  { %369 = vst [vmem:[#allocation2 + $0x58] sm:$0xff] %v344_v63 }
  0xc0   :  { %370 = vst [vmem:[#allocation2 + $0x60] sm:$0xff] %v259_v3 }
  0xc1   :  { %371 = vst [vmem:[#allocation2 + $0x68] sm:$0xff] %v288_v4 }
  0xc3   :  { %v316_v5 = vpop.f32.mrf.mxu2  ;;  %v345_v6 = vpop.f32.mrf.mxu3 }
  0xc4   :  { %v317_v7 = vadd.f32 %v316_v5, %v2451_v42  ;;  %v346_v8 = vadd.f32 %v345_v6, %v2453_v43  ;;  %v261_v9 = vpop.f32.mrf.mxu0  ;;  %v290_v10 = vpop.f32.mrf.mxu1 }
  0xc5   :  { %v262_v11 = vadd.f32 %v261_v9, %v2445_v36  ;;  %v291_v12 = vadd.f32 %v290_v10, %v2447_v37 }
  0xc6   :  { %372 = vst [vmem:[#allocation2 + $0x70] sm:$0xff] %v317_v7 }
  0xc7   :  { %373 = vst [vmem:[#allocation2 + $0x78] sm:$0xff] %v346_v8 }
  0xc8   :  { %374 = vst [vmem:[#allocation2 + $0x80] sm:$0xff] %v262_v11 }
  0xc9   :  { %375 = vst [vmem:[#allocation2 + $0x88] sm:$0xff] %v291_v12 }
  0xcb   :  { %v319_v13 = vpop.f32.mrf.mxu2  ;;  %v348_v14 = vpop.f32.mrf.mxu3 }
  0xcc   :  { %v320_v15 = vadd.f32 %v319_v13, %v2451_v42  ;;  %v349_v16 = vadd.f32 %v348_v14, %v2453_v43  ;;  %v263_v17 = vpop.f32.mrf.mxu0  ;;  %v292_v18 = vpop.f32.mrf.mxu1 }
  0xcd   :  { %v264_v19 = vadd.f32 %v263_v17, %v2445_v36  ;;  %v293_v20 = vadd.f32 %v292_v18, %v2447_v37 }
  0xce   :  { %376 = vst [vmem:[#allocation2 + $0x90] sm:$0xff] %v320_v15 }
  0xcf   :  { %377 = vst [vmem:[#allocation2 + $0x98] sm:$0xff] %v349_v16 }
  0xd0   :  { %378 = vst [vmem:[#allocation2 + $0xa0] sm:$0xff] %v264_v19 }
  0xd1   :  { %379 = vst [vmem:[#allocation2 + $0xa8] sm:$0xff] %v293_v20 }
  0xd3   :  { %v321_v21 = vpop.f32.mrf.mxu2  ;;  %v350_v22 = vpop.f32.mrf.mxu3 }
  0xd4   :  { %v322_v23 = vadd.f32 %v321_v21, %v2451_v42  ;;  %v351_v24 = vadd.f32 %v350_v22, %v2453_v43  ;;  %v266_v25 = vpop.f32.mrf.mxu0  ;;  %v295_v26 = vpop.f32.mrf.mxu1 }
  0xd5   :  { %v267_v27 = vadd.f32 %v266_v25, %v2445_v36  ;;  %v296_v28 = vadd.f32 %v295_v26, %v2447_v37 }
  0xd6   :  { %380 = vst [vmem:[#allocation2 + $0xb0] sm:$0xff] %v322_v23 }
  0xd7   :  { %381 = vst [vmem:[#allocation2 + $0xb8] sm:$0xff] %v351_v24 }
  0xd8   :  { %382 = vst [vmem:[#allocation2 + $0xc0] sm:$0xff] %v267_v27 }
  0xd9   :  { %383 = vst [vmem:[#allocation2 + $0xc8] sm:$0xff] %v296_v28 }
  0xdb   :  { %v324_v29 = vpop.f32.mrf.mxu2  ;;  %v353_v30 = vpop.f32.mrf.mxu3 }
  0xdc   :  { %v325_v31 = vadd.f32 %v324_v29, %v2451_v42  ;;  %v354_v32 = vadd.f32 %v353_v30, %v2453_v43  ;;  %v268_v33 = vpop.f32.mrf.mxu0  ;;  %v297_v34 = vpop.f32.mrf.mxu1 }
  0xdd   :  { %v269_v35 = vadd.f32 %v268_v33, %v2445_v36  ;;  %v298_v38 = vadd.f32 %v297_v34, %v2447_v37 }
  0xde   :  { %384 = vst [vmem:[#allocation2 + $0xd0] sm:$0xff] %v325_v31 }
  0xdf   :  { %385 = vst [vmem:[#allocation2 + $0xd8] sm:$0xff] %v354_v32 }
  0xe0   :  { %386 = vst [vmem:[#allocation2 + $0xe0] sm:$0xff] %v269_v35 }
  0xe1   :  { %387 = vst [vmem:[#allocation2 + $0xe8] sm:$0xff] %v298_v38 }
  0xe3   :  { %v326_v44 = vpop.f32.mrf.mxu2  ;;  %v355_v45 = vpop.f32.mrf.mxu3 }
  0xe4   :  { %v327_v46 = vadd.f32 %v326_v44, %v2451_v42  ;;  %v356_v36 = vadd.f32 %v355_v45, %v2453_v43  ;;  %v531_v47 = vpop.f32.mrf.mxu0  ;;  %v560_v37 = vpop.f32.mrf.mxu1 }
  0xe5   :  { %v532_v48 = vadd.f32 %v531_v47, %v2486_v40  ;;  %v561_v49 = vadd.f32 %v560_v37, %v2488_v41 }
  0xe6   :  { %388 = vst [vmem:[#allocation2 + $0xf0] sm:$0xff] %v327_v46 }
  0xe7   :  { %389 = vst [vmem:[#allocation2 + $0xf8] sm:$0xff] %v356_v36 }
  0xe8   :  { %638 = vst [vmem:[#allocation3] sm:$0xff] %v532_v48 }
  0xe9   :  { %639 = vst [vmem:[#allocation3 + $0x8] sm:$0xff] %v561_v49 }
  0xeb   :  { %v589_v52 = vpop.f32.mrf.mxu2  ;;  %v618_v53 = vpop.f32.mrf.mxu3 }
  0xec   :  { %v590_v42 = vadd.f32 %v589_v52, %v2494_v50  ;;  %v619_v43 = vadd.f32 %v618_v53, %v2496_v51  ;;  %v533_v54 = vpop.f32.mrf.mxu0  ;;  %v562_v55 = vpop.f32.mrf.mxu1  ;;  %v2528_v53 = vmov 0.0  }
  0xed   :  { %v534_v56 = vadd.f32 %v533_v54, %v2486_v40  ;;  %v563_v57 = vadd.f32 %v562_v55, %v2488_v41 }
  0xee   :  { %640 = vst [vmem:[#allocation3 + $0x10] sm:$0xff] %v590_v42  ;;  %v2530_v42 = vmov 0.0  }
  0xef   :  { %641 = vst [vmem:[#allocation3 + $0x18] sm:$0xff] %v619_v43  ;;  %v2532_v43 = vmov 0.0  }
  0xf0   :  { %642 = vst [vmem:[#allocation3 + $0x20] sm:$0xff] %v534_v56 }
  0xf1   :  { %643 = vst [vmem:[#allocation3 + $0x28] sm:$0xff] %v563_v57 }
  0xf3   :  { %v591_v58 = vpop.f32.mrf.mxu2  ;;  %v620_v59 = vpop.f32.mrf.mxu3 }
  0xf4   :  { %v592_v60 = vadd.f32 %v591_v58, %v2494_v50  ;;  %v621_v61 = vadd.f32 %v620_v59, %v2496_v51  ;;  %v536_v62 = vpop.f32.mrf.mxu0  ;;  %v565_v63 = vpop.f32.mrf.mxu1 }
  0xf5   :  { %v537_v1 = vadd.f32 %v536_v62, %v2486_v40  ;;  %v566_v2 = vadd.f32 %v565_v63, %v2488_v41 }
  0xf6   :  { %644 = vst [vmem:[#allocation3 + $0x30] sm:$0xff] %v592_v60 }
  0xf7   :  { %645 = vst [vmem:[#allocation3 + $0x38] sm:$0xff] %v621_v61 }
  0xf8   :  { %646 = vst [vmem:[#allocation3 + $0x40] sm:$0xff] %v537_v1 }
  0xf9   :  { %647 = vst [vmem:[#allocation3 + $0x48] sm:$0xff] %v566_v2 }
  0xfb   :  { %v594_v3 = vpop.f32.mrf.mxu2  ;;  %v623_v4 = vpop.f32.mrf.mxu3 }
  0xfc   :  { %v595_v5 = vadd.f32 %v594_v3, %v2494_v50  ;;  %v624_v6 = vadd.f32 %v623_v4, %v2496_v51  ;;  %v538_v7 = vpop.f32.mrf.mxu0  ;;  %v567_v8 = vpop.f32.mrf.mxu1 }
  0xfd   :  { %v539_v9 = vadd.f32 %v538_v7, %v2486_v40  ;;  %v568_v10 = vadd.f32 %v567_v8, %v2488_v41 }
  0xfe   :  { %648 = vst [vmem:[#allocation3 + $0x50] sm:$0xff] %v595_v5 }
  0xff   :  { %649 = vst [vmem:[#allocation3 + $0x58] sm:$0xff] %v624_v6 }
 0x100   :  { %650 = vst [vmem:[#allocation3 + $0x60] sm:$0xff] %v539_v9 }
 0x101   :  { %651 = vst [vmem:[#allocation3 + $0x68] sm:$0xff] %v568_v10 }
 0x103   :  { %v596_v11 = vpop.f32.mrf.mxu2  ;;  %v625_v12 = vpop.f32.mrf.mxu3 }
 0x104   :  { %v597_v13 = vadd.f32 %v596_v11, %v2494_v50  ;;  %v626_v14 = vadd.f32 %v625_v12, %v2496_v51  ;;  %v541_v15 = vpop.f32.mrf.mxu0  ;;  %v570_v16 = vpop.f32.mrf.mxu1 }
 0x105   :  { %v542_v17 = vadd.f32 %v541_v15, %v2486_v40  ;;  %v571_v18 = vadd.f32 %v570_v16, %v2488_v41 }
 0x106   :  { %652 = vst [vmem:[#allocation3 + $0x70] sm:$0xff] %v597_v13 }
 0x107   :  { %653 = vst [vmem:[#allocation3 + $0x78] sm:$0xff] %v626_v14 }
 0x108   :  { %654 = vst [vmem:[#allocation3 + $0x80] sm:$0xff] %v542_v17 }
 0x109   :  { %655 = vst [vmem:[#allocation3 + $0x88] sm:$0xff] %v571_v18 }
 0x10b   :  { %v599_v19 = vpop.f32.mrf.mxu2  ;;  %v628_v20 = vpop.f32.mrf.mxu3 }
 0x10c   :  { %v600_v21 = vadd.f32 %v599_v19, %v2494_v50  ;;  %v629_v22 = vadd.f32 %v628_v20, %v2496_v51  ;;  %v543_v23 = vpop.f32.mrf.mxu0  ;;  %v572_v24 = vpop.f32.mrf.mxu1 }
 0x10d   :  { %v544_v25 = vadd.f32 %v543_v23, %v2486_v40  ;;  %v573_v26 = vadd.f32 %v572_v24, %v2488_v41 }
 0x10e   :  { %656 = vst [vmem:[#allocation3 + $0x90] sm:$0xff] %v600_v21 }
 0x10f   :  { %657 = vst [vmem:[#allocation3 + $0x98] sm:$0xff] %v629_v22 }
 0x110   :  { %658 = vst [vmem:[#allocation3 + $0xa0] sm:$0xff] %v544_v25 }
 0x111   :  { %659 = vst [vmem:[#allocation3 + $0xa8] sm:$0xff] %v573_v26 }
 0x113   :  { %v601_v27 = vpop.f32.mrf.mxu2  ;;  %v630_v28 = vpop.f32.mrf.mxu3 }
 0x114   :  { %v602_v29 = vadd.f32 %v601_v27, %v2494_v50  ;;  %v631_v30 = vadd.f32 %v630_v28, %v2496_v51  ;;  %v546_v31 = vpop.f32.mrf.mxu0  ;;  %v575_v32 = vpop.f32.mrf.mxu1 }
 0x115   :  { %v547_v33 = vadd.f32 %v546_v31, %v2486_v40  ;;  %v576_v34 = vadd.f32 %v575_v32, %v2488_v41 }
 0x116   :  { %660 = vst [vmem:[#allocation3 + $0xb0] sm:$0xff] %v602_v29 }
 0x117   :  { %661 = vst [vmem:[#allocation3 + $0xb8] sm:$0xff] %v631_v30 }
 0x118   :  { %662 = vst [vmem:[#allocation3 + $0xc0] sm:$0xff] %v547_v33 }
 0x119   :  { %663 = vst [vmem:[#allocation3 + $0xc8] sm:$0xff] %v576_v34 }
 0x11b   :  { %v604_v35 = vpop.f32.mrf.mxu2  ;;  %v633_v38 = vpop.f32.mrf.mxu3 }
 0x11c   :  { %v605_v39 = vadd.f32 %v604_v35, %v2494_v50  ;;  %v634_v44 = vadd.f32 %v633_v38, %v2496_v51  ;;  %v548_v45 = vpop.f32.mrf.mxu0  ;;  %v577_v46 = vpop.f32.mrf.mxu1 }
 0x11d   :  { %v549_v36 = vadd.f32 %v548_v45, %v2486_v40  ;;  %v578_v47 = vadd.f32 %v577_v46, %v2488_v41  ;;  %v2534_v40 = vmov 0.0  }
 0x11e   :  { %664 = vst [vmem:[#allocation3 + $0xd0] sm:$0xff] %v605_v39 }
 0x11f   :  { %665 = vst [vmem:[#allocation3 + $0xd8] sm:$0xff] %v634_v44 }
 0x120   :  { %666 = vst [vmem:[#allocation3 + $0xe0] sm:$0xff] %v549_v36 }
 0x121   :  { %667 = vst [vmem:[#allocation3 + $0xe8] sm:$0xff] %v578_v47 }
 0x123   :  { %v606_v37 = vpop.f32.mrf.mxu2  ;;  %v635_v48 = vpop.f32.mrf.mxu3 }
 0x124   :  { %v607_v49 = vadd.f32 %v606_v37, %v2494_v50  ;;  %v636_v52 = vadd.f32 %v635_v48, %v2496_v51 }
 0x126   :  { %668 = vst [vmem:[#allocation3 + $0xf0] sm:$0xff] %v607_v49 }
 0x127   :  { %669 = vst [vmem:[#allocation3 + $0xf8] sm:$0xff] %v636_v52 }
 0x128 LB: > { %v1659_v41 = vld [vmem:[#allocation12 + $0xe0] sm:$0xf]  ;;  %v1850_v50 = vld [vmem:[#allocation12 + $0xec] sm:$0xf0]  ;;  %v1848_v51 = vld [vmem:[#allocation12 + $0xe4] sm:$0xf]  ;;  %s2294_s4 = sphi %s2536_s4, %s685_s4   ;;  %v2290_v40 = vphi %v2534_v40, %v2671_v40   ;;  %v2286_v43 = vphi %v2532_v43, %v2670_v43   ;;  %v2282_v42 = vphi %v2530_v42, %v2669_v42   ;;  %v2278_v53 = vphi %v2528_v53, %v2668_v53  }
 0x129   : > { %v1660_v54 = vor.u32 %v1850_v50, %v1659_v41  ;;  %v1661_v55 = vld [vmem:[#allocation12 + $0xf0] sm:$0xf0]  ;;  %v1849_v56 = vld [vmem:[#allocation12 + $0xec] sm:$0xf]  ;;  %v1669_v57 = vld [vmem:[#allocation12 + $0xf8] sm:$0xf0] }
 0x12a   : > { %v1664_v58 = vor.u32 %v1848_v51, %v1661_v55  ;;  %v1672_v59 = vor.u32 %v1849_v56, %v1669_v57  ;;  %v1643_v60 = vld [vmem:[#allocation12 + $0xc0] sm:$0xf]  ;;  %v1846_v61 = vld [vmem:[#allocation12 + $0xcc] sm:$0xf0]  ;;  %v1844_v62 = vld [vmem:[#allocation12 + $0xc4] sm:$0xf] }
 0x12b   : > { %890 = vmatpush.bf16.msra.mxu0 %v1660_v54  ;;  %v1644_v63 = vor.u32 %v1846_v61, %v1643_v60  ;;  %v1645_v1 = vld [vmem:[#allocation12 + $0xd0] sm:$0xf0]  ;;  %v1845_v2 = vld [vmem:[#allocation12 + $0xcc] sm:$0xf]  ;;  %v1653_v3 = vld [vmem:[#allocation12 + $0xd8] sm:$0xf0] }
 0x12c   : > { %903 = vmatpush.bf16.msra.mxu1 %v1664_v58  ;;  %929 = vmatpush.bf16.msra.mxu3 %v1672_v59  ;;  %v1648_v4 = vor.u32 %v1844_v62, %v1645_v1  ;;  %v1656_v5 = vor.u32 %v1845_v2, %v1653_v3  ;;  %v1667_v6 = vld [vmem:[#allocation12 + $0xe8] sm:$0xf]  ;;  %v1851_v7 = vld [vmem:[#allocation12 + $0xf4] sm:$0xf0]  ;;  %v1627_v8 = vld [vmem:[#allocation12 + $0xa0] sm:$0xf] }
 0x12d   : > { %v1668_v9 = vor.u32 %v1851_v7, %v1667_v6  ;;  %v1842_v10 = vld [vmem:[#allocation12 + $0xac] sm:$0xf0]  ;;  %v1840_v11 = vld [vmem:[#allocation12 + $0xa4] sm:$0xf]  ;;  %v1629_v12 = vld [vmem:[#allocation12 + $0xb0] sm:$0xf0] }
 0x12e   : > { %v1841_v13 = vld [vmem:[#allocation12 + $0xac] sm:$0xf]  ;;  %v1637_v14 = vld [vmem:[#allocation12 + $0xb8] sm:$0xf0]  ;;  %v1651_v15 = vld [vmem:[#allocation12 + $0xc8] sm:$0xf]  ;;  %v1628_v16 = vor.u32 %v1842_v10, %v1627_v8  ;;  %v1632_v20 = vor.u32 %v1840_v11, %v1629_v12 }
 0x12f   : > { %891 = vmatpush.bf16.msra.mxu0 %v1644_v63  ;;  %916 = vmatpush.bf16.msra.mxu2 %v1668_v9  ;;  %v1847_v17 = vld [vmem:[#allocation12 + $0xd4] sm:$0xf0]  ;;  %v1611_v18 = vld [vmem:[#allocation12 + $0x80] sm:$0xf]  ;;  %v1838_v19 = vld [vmem:[#allocation12 + $0x8c] sm:$0xf0]  ;;  %v1640_v21 = vor.u32 %v1841_v13, %v1637_v14 }
 0x130   : > { %904 = vmatpush.bf16.msra.mxu1 %v1648_v4  ;;  %930 = vmatpush.bf16.msra.mxu3 %v1656_v5  ;;  %v1652_v22 = vor.u32 %v1847_v17, %v1651_v15  ;;  %v1836_v23 = vld [vmem:[#allocation12 + $0x84] sm:$0xf]  ;;  %v1613_v24 = vld [vmem:[#allocation12 + $0x90] sm:$0xf0]  ;;  %v1837_v25 = vld [vmem:[#allocation12 + $0x8c] sm:$0xf]  ;;  %v1612_v29 = vor.u32 %v1838_v19, %v1611_v18 }
 0x131   : > { %v1621_v26 = vld [vmem:[#allocation12 + $0x98] sm:$0xf0]  ;;  %v1635_v27 = vld [vmem:[#allocation12 + $0xa8] sm:$0xf]  ;;  %v1843_v28 = vld [vmem:[#allocation12 + $0xb4] sm:$0xf0]  ;;  %v1616_v33 = vor.u32 %v1836_v23, %v1613_v24 }
 0x132   : > { %v1636_v30 = vor.u32 %v1843_v28, %v1635_v27  ;;  %v1595_v31 = vld [vmem:[#allocation12 + $0x60] sm:$0xf]  ;;  %v1834_v32 = vld [vmem:[#allocation12 + $0x6c] sm:$0xf0]  ;;  %v1624_v34 = vor.u32 %v1837_v25, %v1621_v26  ;;  %v1832_v35 = vld [vmem:[#allocation12 + $0x64] sm:$0xf] }
 0x133   : > { %892 = vmatpush.bf16.msra.mxu0 %v1628_v16  ;;  %917 = vmatpush.bf16.msra.mxu2 %v1652_v22  ;;  %v1619_v38 = vld [vmem:[#allocation12 + $0x88] sm:$0xf]  ;;  %v1839_v39 = vld [vmem:[#allocation12 + $0x94] sm:$0xf0]  ;;  %v1597_v44 = vld [vmem:[#allocation12 + $0x70] sm:$0xf0]  ;;  %v1596_v36 = vor.u32 %v1834_v32, %v1595_v31 }
 0x134   : > { %905 = vmatpush.bf16.msra.mxu1 %v1632_v20  ;;  %931 = vmatpush.bf16.msra.mxu3 %v1640_v21  ;;  %v1833_v45 = vld [vmem:[#allocation12 + $0x6c] sm:$0xf]  ;;  %v1605_v46 = vld [vmem:[#allocation12 + $0x78] sm:$0xf0]  ;;  %v1620_v47 = vor.u32 %v1839_v39, %v1619_v38  ;;  %v1579_v37 = vld [vmem:[#allocation12 + $0x40] sm:$0xf]  ;;  %v1600_v49 = vor.u32 %v1832_v35, %v1597_v44  ;;  %v697_v38 = vpack.c.bf16 %v2290_v40, %v2290_v40 }
 0x135   : > { %v1830_v48 = vld [vmem:[#allocation12 + $0x4c] sm:$0xf0]  ;;  %v1608_v52 = vor.u32 %v1833_v45, %v1605_v46  ;;  %v1828_v41 = vld [vmem:[#allocation12 + $0x44] sm:$0xf]  ;;  %v1603_v50 = vld [vmem:[#allocation12 + $0x68] sm:$0xf] }
 0x136   : > { %v1835_v51 = vld [vmem:[#allocation12 + $0x74] sm:$0xf0]  ;;  %v1581_v54 = vld [vmem:[#allocation12 + $0x50] sm:$0xf0]  ;;  %v1829_v55 = vld [vmem:[#allocation12 + $0x4c] sm:$0xf]  ;;  %v1580_v57 = vor.u32 %v1830_v48, %v1579_v37 }
 0x137   : > { %893 = vmatpush.bf16.msra.mxu0 %v1612_v29  ;;  %918 = vmatpush.bf16.msra.mxu2 %v1636_v30  ;;  %v1589_v56 = vld [vmem:[#allocation12 + $0x58] sm:$0xf0]  ;;  %v1604_v58 = vor.u32 %v1835_v51, %v1603_v50  ;;  %v1563_v59 = vld [vmem:[#allocation12 + $0x20] sm:$0xf]  ;;  %v1826_v60 = vld [vmem:[#allocation12 + $0x2c] sm:$0xf0]  ;;  %v1584_v61 = vor.u32 %v1828_v41, %v1581_v54 }
 0x138   : > { %906 = vmatpush.bf16.msra.mxu1 %v1616_v33  ;;  %932 = vmatpush.bf16.msra.mxu3 %v1624_v34  ;;  %v1592_v62 = vor.u32 %v1829_v55, %v1589_v56  ;;  %v1824_v63 = vld [vmem:[#allocation12 + $0x24] sm:$0xf]  ;;  %v1587_v1 = vld [vmem:[#allocation12 + $0x48] sm:$0xf]  ;;  %v1831_v2 = vld [vmem:[#allocation12 + $0x54] sm:$0xf0]  ;;  %v1564_v6 = vor.u32 %v1826_v60, %v1563_v59 }
 0x139   : > { %v1565_v3 = vld [vmem:[#allocation12 + $0x30] sm:$0xf0]  ;;  %v1825_v4 = vld [vmem:[#allocation12 + $0x2c] sm:$0xf]  ;;  %v1573_v5 = vld [vmem:[#allocation12 + $0x38] sm:$0xf0]  ;;  %v1588_v7 = vor.u32 %v1831_v2, %v1587_v1  ;;  %v1010_v2 = vstv %s2294_s4 }
 0x13a   : > { %v1547_v8 = vld [vmem:[#allocation12] sm:$0xf]  ;;  %v1822_v9 = vld [vmem:[#allocation12 + $0xc] sm:$0xf0]  ;;  %v1820_v10 = vld [vmem:[#allocation12 + $0x4] sm:$0xf]  ;;  %v1568_v11 = vor.u32 %v1824_v63, %v1565_v3  ;;  %v1576_v12 = vor.u32 %v1825_v4, %v1573_v5  ;;  %vm2557_vm1 = vcmp.lt.s32.totalorder %v1010_v2, %v2376_v0 }
 0x13b   : > { %894 = vmatpush.bf16.msra.mxu0 %v1596_v36  ;;  %919 = vmatpush.bf16.msra.mxu2 %v1620_v47  ;;  %v1549_v13 = vld [vmem:[#allocation12 + $0x10] sm:$0xf0]  ;;  %v1571_v14 = vld [vmem:[#allocation12 + $0x28] sm:$0xf]  ;;  %v1827_v15 = vld [vmem:[#allocation12 + $0x34] sm:$0xf0]  ;;  %v1548_v22 = vor.u32 %v1822_v9, %v1547_v8 }
 0x13c   : > { %907 = vmatpush.bf16.msra.mxu1 %v1600_v49  ;;  %933 = vmatpush.bf16.msra.mxu3 %v1608_v52  ;;  %v1821_v16 = vld [vmem:[#allocation12 + $0xc] sm:$0xf]  ;;  %v1557_v17 = vld [vmem:[#allocation12 + $0x18] sm:$0xf0]  ;;  %v1793_v18 = vld [vmem:[#allocation12 + $0x1e0] sm:$0xf]  ;;  %v1572_v25 = vor.u32 %v1827_v15, %v1571_v14  ;;  %v1552_v26 = vor.u32 %v1820_v10, %v1549_v13 }
 0x13d   : > { %v1883_v19 = vld [vmem:[#allocation12 + $0x1ec] sm:$0xf0]  ;;  %v1881_v20 = vld [vmem:[#allocation12 + $0x1e4] sm:$0xf]  ;;  %v1795_v21 = vld [vmem:[#allocation12 + $0x1f0] sm:$0xf0]  ;;  %v1560_v27 = vor.u32 %v1821_v16, %v1557_v17 }
 0x13e   : > { %v1882_v23 = vld [vmem:[#allocation12 + $0x1ec] sm:$0xf]  ;;  %v1803_v24 = vld [vmem:[#allocation12 + $0x1f8] sm:$0xf0]  ;;  %v1555_v28 = vld [vmem:[#allocation12 + $0x8] sm:$0xf]  ;;  %v1794_v30 = vor.u32 %v1883_v19, %v1793_v18  ;;  %v1798_v31 = vor.u32 %v1881_v20, %v1795_v21 }
 0x13f   : > { %895 = vmatpush.bf16.msra.mxu0 %v1580_v57  ;;  %920 = vmatpush.bf16.msra.mxu2 %v1604_v58  ;;  %v1823_v29 = vld [vmem:[#allocation12 + $0x14] sm:$0xf0]  ;;  %v1777_v32 = vld [vmem:[#allocation12 + $0x1c0] sm:$0xf]  ;;  %v1801_v33 = vld [vmem:[#allocation12 + $0x1e8] sm:$0xf]  ;;  %v1806_v35 = vor.u32 %v1882_v23, %v1803_v24 }
 0x140   : > { %908 = vmatpush.bf16.msra.mxu1 %v1584_v61  ;;  %934 = vmatpush.bf16.msra.mxu3 %v1592_v62  ;;  %v1884_v34 = vld [vmem:[#allocation12 + $0x1f4] sm:$0xf0]  ;;  %v1879_v39 = vld [vmem:[#allocation12 + $0x1cc] sm:$0xf0]  ;;  %v1877_v44 = vld [vmem:[#allocation12 + $0x1c4] sm:$0xf]  ;;  %v1556_v47 = vor.u32 %v1823_v29, %v1555_v28 }
 0x141   : > { %v1779_v45 = vld [vmem:[#allocation12 + $0x1d0] sm:$0xf0]  ;;  %v1878_v46 = vld [vmem:[#allocation12 + $0x1cc] sm:$0xf]  ;;  %v1787_v36 = vld [vmem:[#allocation12 + $0x1d8] sm:$0xf0]  ;;  %v1802_v37 = vor.u32 %v1884_v34, %v1801_v33  ;;  %v1778_v48 = vor.u32 %v1879_v39, %v1777_v32 }
 0x142   : > { %v1782_v49 = vor.u32 %v1877_v44, %v1779_v45  ;;  %v1761_v52 = vld [vmem:[#allocation12 + $0x1a0] sm:$0xf]  ;;  %v1785_v41 = vld [vmem:[#allocation12 + $0x1c8] sm:$0xf]  ;;  %v1880_v50 = vld [vmem:[#allocation12 + $0x1d4] sm:$0xf0]  ;;  %v1790_v51 = vor.u32 %v1878_v46, %v1787_v36 }
 0x143   : > { %896 = vmatpush.bf16.msra.mxu0 %v1564_v6  ;;  %921 = vmatpush.bf16.msra.mxu2 %v1588_v7  ;;  %v1875_v54 = vld [vmem:[#allocation12 + $0x1ac] sm:$0xf0]  ;;  %v1873_v55 = vld [vmem:[#allocation12 + $0x1a4] sm:$0xf]  ;;  %v1763_v56 = vld [vmem:[#allocation12 + $0x1b0] sm:$0xf0]  ;;  %v1786_v59 = vor.u32 %v1880_v50, %v1785_v41 }
 0x144   : > { %909 = vmatpush.bf16.msra.mxu1 %v1568_v11  ;;  %935 = vmatpush.bf16.msra.mxu3 %v1576_v12  ;;  %v1874_v57 = vld [vmem:[#allocation12 + $0x1ac] sm:$0xf]  ;;  %v1771_v58 = vld [vmem:[#allocation12 + $0x1b8] sm:$0xf0]  ;;  %v1762_v60 = vor.u32 %v1875_v54, %v1761_v52  ;;  %v1766_v61 = vor.u32 %v1873_v55, %v1763_v56  ;;  %v1745_v62 = vld [vmem:[#allocation12 + $0x180] sm:$0xf] }
 0x145   : > { %v1769_v63 = vld [vmem:[#allocation12 + $0x1a8] sm:$0xf]  ;;  %v1876_v1 = vld [vmem:[#allocation12 + $0x1b4] sm:$0xf0]  ;;  %v1774_v3 = vor.u32 %v1874_v57, %v1771_v58  ;;  %v1871_v4 = vld [vmem:[#allocation12 + $0x18c] sm:$0xf0] }
 0x146   : > { %v1869_v5 = vld [vmem:[#allocation12 + $0x184] sm:$0xf]  ;;  %v1747_v6 = vld [vmem:[#allocation12 + $0x190] sm:$0xf0]  ;;  %v1870_v7 = vld [vmem:[#allocation12 + $0x18c] sm:$0xf]  ;;  %v1770_v9 = vor.u32 %v1876_v1, %v1769_v63  ;;  %v1746_v12 = vor.u32 %v1871_v4, %v1745_v62 }
 0x147   : > { %897 = vmatpush.bf16.msra.mxu0 %v1548_v22  ;;  %922 = vmatpush.bf16.msra.mxu2 %v1572_v25  ;;  %v1755_v8 = vld [vmem:[#allocation12 + $0x198] sm:$0xf0]  ;;  %v1729_v10 = vld [vmem:[#allocation12 + $0x160] sm:$0xf]  ;;  %v1750_v13 = vor.u32 %v1869_v5, %v1747_v6  ;;  %v1867_v14 = vld [vmem:[#allocation12 + $0x16c] sm:$0xf0] }
 0x148   : > { %910 = vmatpush.bf16.msra.mxu1 %v1552_v26  ;;  %936 = vmatpush.bf16.msra.mxu3 %v1560_v27  ;;  %v1753_v15 = vld [vmem:[#allocation12 + $0x188] sm:$0xf]  ;;  %v1872_v16 = vld [vmem:[#allocation12 + $0x194] sm:$0xf0]  ;;  %v1758_v17 = vor.u32 %v1870_v7, %v1755_v8  ;;  %v1865_v18 = vld [vmem:[#allocation12 + $0x164] sm:$0xf]  ;;  %v1730_v26 = vor.u32 %v1867_v14, %v1729_v10 }
 0x149   : > { %v1731_v19 = vld [vmem:[#allocation12 + $0x170] sm:$0xf0]  ;;  %s2562_s13 = ssub.s32 7, %s2294_s4  ;;  %v1866_v20 = vld [vmem:[#allocation12 + $0x16c] sm:$0xf]  ;;  %v2304_v22 = vmov 0   ;;  %v1754_v25 = vor.u32 %v1872_v16, %v1753_v15 }
 0x14a   : > { %898 = vmatmul.bf16.vlgmr.msra.gmra.mxu0 %v697_v38  ;;  %v1739_v21 = vld [vmem:[#allocation12 + $0x178] sm:$0xf0]  ;;  %2019 = vset.pattern.permute.xlu0 %v2304_v22  ;;  %v1012_v23 = vsel %vm2557_vm1, 1, %v2304_v22  ;;  %v1345_v24 = vstv %s2562_s13  ;;  %v1734_v27 = vor.u32 %v1865_v18, %v1731_v19  ;;  %v1713_v28 = vld [vmem:[#allocation12 + $0x140] sm:$0xf]  ;;  %s1819_s14 = sshll.u32 %s2294_s4, 5 }
 0x14b   : > { %1225 = vmatpush.bf16.msrb.mxu0 %v1794_v30  ;;  %911 = vmatmul.bf16.vlgmr.msra.gmra.mxu1 %v697_v38  ;;  %v1737_v29 = vld [vmem:[#allocation12 + $0x168] sm:$0xf]  ;;  %v1868_v30 = vld [vmem:[#allocation12 + $0x174] sm:$0xf0]  ;;  %v1863_v32 = vld [vmem:[#allocation12 + $0x14c] sm:$0xf0]  ;;  %vm1346_vm2 = vcmp.lt.s32.totalorder %v1345_v24, %v2376_v0 }
 0x14c   : > { %1238 = vmatpush.bf16.msrb.mxu1 %v1798_v31  ;;  %1264 = vmatpush.bf16.msrb.mxu3 %v1806_v35  ;;  %v1742_v31 = vor.u32 %v1866_v20, %v1739_v21  ;;  %v1861_v33 = vld [vmem:[#allocation12 + $0x144] sm:$0xf]  ;;  %v1715_v34 = vld [vmem:[#allocation12 + $0x150] sm:$0xf0]  ;;  %v1862_v35 = vld [vmem:[#allocation12 + $0x14c] sm:$0xf]  ;;  %v1738_v39 = vor.u32 %v1868_v30, %v1737_v29  ;;  %v1714_v45 = vor.u32 %v1863_v32, %v1713_v28 }
 0x14d   : > { %923 = vmatpush.bf16.msra.mxu2 %v1556_v47  ;;  %937 = vmatmul.bf16.vlgmr.msra.gmra.mxu3 %v697_v38  ;;  %v1697_v44 = vld [vmem:[#allocation12 + $0x120] sm:$0xf]  ;;  %v1718_v46 = vor.u32 %v1861_v33, %v1715_v34  ;;  %v1721_v36 = vld [vmem:[#allocation12 + $0x148] sm:$0xf]  ;;  %v1864_v47 = vld [vmem:[#allocation12 + $0x154] sm:$0xf0] }
 0x14e   : > { %1014 = vperm.xlu0 %2019, %v1012_v23   ;;  %v1857_v52 = vld [vmem:[#allocation12 + $0x124] sm:$0xf]  ;;  %v1699_v41 = vld [vmem:[#allocation12 + $0x130] sm:$0xf0]  ;;  %v1858_v50 = vld [vmem:[#allocation12 + $0x12c] sm:$0xf]  ;;  %v1722_v54 = vor.u32 %v1864_v47, %v1721_v36 }
 0x14f   : > { %1226 = vmatpush.bf16.msrb.mxu0 %v1778_v48  ;;  %v1702_v56 = vor.u32 %v1857_v52, %v1699_v41  ;;  %v1681_v57 = vld [vmem:[#allocation12 + $0x100] sm:$0xf]  ;;  %v1705_v58 = vld [vmem:[#allocation12 + $0x128] sm:$0xf]  ;;  %v1853_v62 = vld [vmem:[#allocation12 + $0x104] sm:$0xf] }
 0x150   : > { %1239 = vmatpush.bf16.msrb.mxu1 %v1782_v49  ;;  %1265 = vmatpush.bf16.msrb.mxu3 %v1790_v51  ;;  %v1859_v49 = vld [vmem:[#allocation12 + $0x12c] sm:$0xf0]  ;;  %v1707_v51 = vld [vmem:[#allocation12 + $0x138] sm:$0xf0]  ;;  %v1683_v63 = vld [vmem:[#allocation12 + $0x110] sm:$0xf0] }
 0x151   : > { %1251 = vmatpush.bf16.msrb.mxu2 %v1802_v37  ;;  %v1347_v37 = vsel %vm1346_vm2, 1, %v2304_v22  ;;  %v1698_v55 = vor.u32 %v1859_v49, %v1697_v44  ;;  %v1854_v1 = vld [vmem:[#allocation12 + $0x10c] sm:$0xf]  ;;  %v1691_v2 = vld [vmem:[#allocation12 + $0x118] sm:$0xf0]  ;;  %v1686_v5 = vor.u32 %v1853_v62, %v1683_v63  ;;  %s692_s15 = scalar_lea.vmem [#allocation2], %s1819_s14 }
 0x152   : > { %924 = vmatmul.bf16.vlgmr.msra.gmra.mxu2 %v697_v38  ;;  %v1723_v38 = vld [vmem:[#allocation12 + $0x158] sm:$0xf0]  ;;  %v1694_v6 = vor.u32 %v1854_v1, %v1691_v2  ;;  %v1689_v7 = vld [vmem:[#allocation12 + $0x108] sm:$0xf]  ;;  %v1856_v8 = vld [vmem:[#allocation12 + $0x114] sm:$0xf0] }
 0x153   : > { %1227 = vmatpush.bf16.msrb.mxu0 %v1762_v60  ;;  %v1726_v48 = vor.u32 %v1862_v35, %v1723_v38  ;;  %v1710_v60 = vor.u32 %v1858_v50, %v1707_v51  ;;  %v1690_v10 = vor.u32 %v1856_v8, %v1689_v7  ;;  %v693_v11 = vld [vmem:[%s692_s15] sm:$0xff]  ;;  %v696_v19 = vld [vmem:[%s692_s15 + $0x18] sm:$0xff]  ;;  %v695_v30 = vld [vmem:[%s692_s15 + $0x10] sm:$0xff]  ;;  %s1852_s16 = sshll.u32 %s2562_s13, 5  ;;  %s1676_s18 = sshll.u32 %s2294_s4, 3 }
 0x154   : > { %1240 = vmatpush.bf16.msrb.mxu1 %v1766_v61  ;;  %1266 = vmatpush.bf16.msrb.mxu3 %v1774_v3  ;;  %v1855_v61 = vld [vmem:[#allocation12 + $0x10c] sm:$0xf0]  ;;  %s2583_s17 = scalar_lea.vmem [#allocation3], %s1852_s16  ;;  %s1019_s19 = scalar_lea.vmem [#allocation14], %s1676_s18 }
 0x155   : > { %1252 = vmatpush.bf16.msrb.mxu2 %v1786_v59  ;;  %v1860_v59 = vld [vmem:[#allocation12 + $0x134] sm:$0xf0]  ;;  %v1682_v4 = vor.u32 %v1855_v61, %v1681_v57  ;;  %s1810_s20 = sshll.u32 %s2562_s13, 3  ;;  %s685_s4 = sadd.s32 1, %s2294_s4  }
 0x156   : > { %1349 = vperm.xlu0 %2019, %v1347_v37   ;;  %v1706_v3 = vor.u32 %v1860_v59, %v1705_v58  ;;  %v1027_v58 = vld [vmem:[%s2583_s17] sm:$0xff]  ;;  %v1028_v59 = vld [vmem:[%s2583_s17 + $0x8] sm:$0xff]  ;;  %s1354_s21 = scalar_lea.vmem [#allocation15], %s1810_s20  ;;  %p682_p0 = scmp.ge.s32.totalorder %s685_s4, 8  }
 0x157   : > { %1228 = vmatpush.bf16.msrb.mxu0 %v1746_v12  ;;  %v694_v12 = vld [vmem:[%s692_s15 + $0x8] sm:$0xff]  ;;  %s1394_s1 = sshll.u32 (%p682_p0), %s2655_s7, 4  ;;  %s2305_s24 = smov (%p682_p0), [#allocation15]   ;;  %s1395_s1 = int_to_ptr.hbm [resolvable:$true] %s1394_s1 }
 0x158   : > { %1241 = vmatpush.bf16.msrb.mxu1 %v1750_v13  ;;  %1267 = vmatpush.bf16.msrb.mxu3 %v1758_v17  ;;  %s1392_s25 = sshll.u32 (%p682_p0), %s2305_s24, 4  ;;  %s2306_s26 = smov (%p682_p0), 128   ;;  %s1393_s25 = int_to_ptr.vmem [resolvable:$true] %s1392_s25 }
 0x159   : > { %1253 = vmatpush.bf16.msrb.mxu2 %v1770_v9  ;;  %v1031_v9 = vpack.c.bf16 %v2282_v42, %v2282_v42  ;;  %s2307_s0 = smov (%p682_p0), 8   ;;  %s2308_s27 = smov (%p682_p0), [#allocation14]  }
 0x15a   :  { %s1375_s28 = sshll.u32 (%p682_p0), %s2308_s27, 4  ;;  %s1377_s3 = sshll.u32 (%p682_p0), %s2654_s6, 4  ;;  %s1376_s28 = int_to_ptr.vmem [resolvable:$true] %s1375_s28  ;;  %s1378_s3 = int_to_ptr.hbm [resolvable:$true] %s1377_s3 }
 0x15b   : > { %1229 = vmatpush.bf16.msrb.mxu0 %v1730_v26  ;;  %s1407_s2 = sshll.u32 (%p682_p0), %s2656_s8, 4  ;;  %s2309_s5 = smov (%p682_p0), [#allocation17]   ;;  %s1408_s2 = int_to_ptr.hbm [resolvable:$true] %s1407_s2 }
 0x15c   : > { %1242 = vmatpush.bf16.msrb.mxu1 %v1734_v27  ;;  %1268 = vmatpush.bf16.msrb.mxu3 %v1742_v31  ;;  %s1405_s11 = sshll.u32 (%p682_p0), %s2309_s5, 4  ;;  %s2310_s12 = smov (%p682_p0), [#allocation18]   ;;  %s1406_s11 = int_to_ptr.vmem [resolvable:$true] %s1405_s11 }
 0x15d   : > { %1254 = vmatpush.bf16.msrb.mxu2 %v1754_v25  ;;  %s1418_s4 = sshll.u32 (%p682_p0), %s2310_s12, 4  ;;  %s1420_s15 = sshll.u32 (%p682_p0), %s2657_s9, 4  ;;  %s1419_s4 = int_to_ptr.vmem [resolvable:$true] %s1418_s4  ;;  %s1421_s15 = int_to_ptr.hbm [resolvable:$true] %s1420_s15 }
 0x15f   : > { %1230 = vmatpush.bf16.msrb.mxu0 %v1714_v45 }
 0x160   : > { %1243 = vmatpush.bf16.msrb.mxu1 %v1718_v46  ;;  %1269 = vmatpush.bf16.msrb.mxu3 %v1726_v48 }
 0x161   : > { %1255 = vmatpush.bf16.msrb.mxu2 %v1738_v39 }
 0x163   : > { %1231 = vmatpush.bf16.msrb.mxu0 %v1698_v55 }
 0x164   : > { %1244 = vmatpush.bf16.msrb.mxu1 %v1702_v56  ;;  %1270 = vmatpush.bf16.msrb.mxu3 %v1710_v60 }
 0x165   : > { %1256 = vmatpush.bf16.msrb.mxu2 %v1722_v54 }
 0x167   : > { %1232 = vmatpush.bf16.msrb.mxu0 %v1682_v4 }
 0x168   : > { %1245 = vmatpush.bf16.msrb.mxu1 %v1686_v5  ;;  %1271 = vmatpush.bf16.msrb.mxu3 %v1694_v6 }
 0x169   : > { %1257 = vmatpush.bf16.msrb.mxu2 %v1706_v3 }
 0x16a   : > { %1233 = vmatmul.bf16.vlgmr.msrb.gmra.mxu0 %v1031_v9 }
 0x16b   : > { %1246 = vmatmul.bf16.vlgmr.msrb.gmra.mxu1 %v1031_v9  ;;  %1272 = vmatmul.bf16.vlgmr.msrb.gmra.mxu3 %v1031_v9 }
 0x16d   : > { %1258 = vmatpush.bf16.msrb.mxu2 %v1690_v10 }
 0x170   : > { %1259 = vmatmul.bf16.vlgmr.msrb.gmra.mxu2 %v1031_v9 }
 0x1c0   : > { %v1015_v9 = vpop.permute.xlu0 %1014 }
 0x1c1   : > { %vm1016_vm13 = vcmp.eq.s32.totalorder %v1015_v9, 1 }
 0x1c7   : > { %v899_v13 = vpop.f32.mrf.mxu0 }
 0x1c8   : > { %v942_v14 = vadd.f32 %v899_v13, %v693_v11  ;;  %v912_v15 = vpop.f32.mrf.mxu1 }
 0x1c9   : > { %v943_v16 = vadd.f32 %v912_v15, %v694_v12 }
 0x1ca   : > { %v1673_v17 = vmul.f32 -1.442695, %v942_v14 }
 0x1cb   : > { %v1674_v18 = vmul.f32 -1.442695, %v943_v16 }
 0x1cc   : > { %2020 = vpow2.f32 %v1673_v17 }
 0x1cd   : > { %2022 = vpow2.f32 %v1674_v18 }
 0x1cf   : > { %v901_v21 = vpop.f32.mrf.mxu0 }
 0x1d0   : > { %v938_v20 = vpop.f32.mrf.mxu3  ;;  %v914_v23 = vpop.f32.mrf.mxu1 }
 0x1d1   : > { %v945_v22 = vadd.f32 %v938_v20, %v696_v19  ;;  %v1030_v20 = vld [vmem:[%s2583_s17 + $0x18] sm:$0xff] }
 0x1d2   : > { %v2021_v25 = vpop.eup %2020 }
 0x1d3   : > { %v1675_v26 = vmul.f32 -1.442695, %v945_v22  ;;  %v2023_v27 = vpop.eup %2022  ;;  %v949_v28 = vadd.f32 1.0, %v2021_v25 }
 0x1d4   : > { %v968_v29 = vadd.f32 1.0, %v2023_v27 }
 0x1d5   : > { %v925_v24 = vpop.f32.mrf.mxu2  ;;  %2024 = vpow2.f32 %v1675_v26  ;;  %v961_v46 = vand.u32 2147483648, %v949_v28  ;;  %vm955_vm3 = vweird.f32 %v949_v28  ;;  %v959_v47 = vand.u32 2147483647, %v949_v28 }
 0x1d6   : > { %2026 = vrcp.f32 %v949_v28  ;;  %v944_v32 = vadd.f32 %v925_v24, %v695_v30  ;;  %vm974_vm5 = vweird.f32 %v968_v29  ;;  %v980_v48 = vand.u32 2147483648, %v968_v29 }
 0x1d7   : > { %2028 = vrcp.f32 %v968_v29  ;;  %v978_v52 = vand.u32 2147483647, %v968_v29  ;;  %v962_v50 = vor.u32 1.1754944e-38, %v961_v46  ;;  %vm960_vm8 = vcmp.eq.f32.partialorder %v959_v47, 8.507059e+37 }
 0x1d8   : > { %v940_v31 = vpop.f32.mrf.mxu3  ;;  %2030 = vtanh.f32 %v944_v32  ;;  %v981_v61 = vor.u32 1.1754944e-38, %v980_v48 }
 0x1d9   : > { %vm979_vm10 = vcmp.eq.f32.partialorder %v978_v52, 8.507059e+37 }
 0x1db   : > { %v2025_v34 = vpop.eup %2024 }
 0x1dc   : > { %v2027_v35 = vpop.eup %2026  ;;  %v2571_v38 = vadd.f32 1.0, %v2025_v34 }
 0x1dd   : > { %v927_v33 = vpop.f32.mrf.mxu2  ;;  %v2029_v39 = vpop.eup %2028  ;;  %v951_v44 = vmul.f32 %v2027_v35, %v949_v28  ;;  %vm956_vm4 = vweird.f32 %v2027_v35 }
 0x1de   : > { %v970_v45 = vmul.f32 %v2029_v39, %v968_v29  ;;  %2032 = vrcp.f32 %v2571_v38  ;;  %vm975_vm6 = vweird.f32 %v2029_v39  ;;  %vm2575_vm7 = vmor %vm955_vm3, %vm956_vm4  ;;  %v2031_v54 = vpop.eup %2030  ;;  %vm994_vm11 = vweird.f32 %v2571_v38 }
 0x1df   : > { %v952_v36 = vsub.f32 1.0, %v951_v44  ;;  %vm2579_vm9 = vmor %vm974_vm5, %vm975_vm6  ;;  %v1000_v11 = vand.u32 2147483648, %v2571_v38  ;;  %v998_v16 = vand.u32 2147483647, %v2571_v38 }
 0x1e0   : > { %v971_v37 = vsub.f32 1.0, %v970_v45 }
 0x1e1   : > { %v953_v49 = vmul.f32 %v2027_v35, %v952_v36  ;;  %v1001_v21 = vor.u32 1.1754944e-38, %v1000_v11  ;;  %vm999_vm15 = vcmp.eq.f32.partialorder %v998_v16, 8.507059e+37 }
 0x1e2   : > { %v972_v51 = vmul.f32 %v2029_v39, %v971_v37 }
 0x1e3   : > { %v954_v55 = vadd.f32 %v2027_v35, %v953_v49 }
 0x1e4   : > { %v2033_v57 = vpop.eup %2032  ;;  %v973_v60 = vadd.f32 %v2029_v39, %v972_v51 }
 0x1e5   : > { %v990_v62 = vmul.f32 %v2033_v57, %v2571_v38  ;;  %v958_v63 = vsel %vm2575_vm7, %v2027_v35, %v954_v55  ;;  %vm995_vm12 = vweird.f32 %v2033_v57  ;;  %v1029_v38 = vld [vmem:[%s2583_s17 + $0x10] sm:$0xff] }
 0x1e6   : > { %v963_v1 = vsel %vm960_vm8, %v962_v50, %v958_v63  ;;  %v977_v4 = vsel %vm2579_vm9, %v2029_v39, %v973_v60  ;;  %vm2596_vm14 = vmor %vm994_vm11, %vm995_vm12 }
 0x1e7   : > { %v1234_v2 = vpop.f32.mrf.mxu0  ;;  %v991_v5 = vsub.f32 1.0, %v990_v62  ;;  %v1005_v6 = vmul.f32 %v2031_v54, %v963_v1  ;;  %v982_v10 = vsel %vm979_vm10, %v981_v61, %v977_v4 }
 0x1e8   : > { %v1247_v3 = vpop.f32.mrf.mxu1  ;;  %v1277_v7 = vadd.f32 %v1234_v2, %v1027_v58  ;;  %v1004_v15 = vmul.f32 %v2286_v43, %v982_v10 }
 0x1e9   : > { %v1278_v8 = vadd.f32 %v1247_v3, %v1028_v59  ;;  %v992_v14 = vmul.f32 %v2033_v57, %v991_v5  ;;  %v1350_v5 = vpop.permute.xlu0 %1349 }
 0x1ea   : > { %v1807_v12 = vmul.f32 -1.442695, %v1277_v7  ;;  %v1006_v19 = vadd.f32 %v1005_v6, %v1004_v15  ;;  %vm1351_vm8 = vcmp.eq.s32.totalorder %v1350_v5, 1 }
 0x1eb   : > { %v1808_v13 = vmul.f32 -1.442695, %v1278_v8  ;;  %v993_v17 = vadd.f32 %v2033_v57, %v992_v14 }
 0x1ec   : > { %2034 = vpow2.f32 %v1807_v12  ;;  %v2603_v43 = vsel %vm1016_vm13, %v1006_v19, %v2286_v43  }
 0x1ed   : > { %2036 = vpow2.f32 %v1808_v13  ;;  %v2666_v22 = vmov %v2603_v43  ;;  %v997_v24 = vsel %vm2596_vm14, %v2033_v57, %v993_v17 }
 0x1ee   : > { %2038 = vtanh.f32 %v1006_v19  ;;  %v1273_v23 = vpop.f32.mrf.mxu3  ;;  %v1002_v31 = vsel %vm999_vm15, %v1001_v21, %v997_v24  ;;  %1368 = vst [vmem:[#allocation18] sm:$0xff] (%p682_p0), %v2666_v22 }
 0x1ef   : > { %v1280_v25 = vadd.f32 %v1273_v23, %v1030_v20  ;;  %v1236_v26 = vpop.f32.mrf.mxu0 }
 0x1f0   : > { %v1249_v27 = vpop.f32.mrf.mxu1 }
 0x1f1   : > { %v1809_v28 = vmul.f32 -1.442695, %v1280_v25 }
 0x1f2   : > { %v2035_v30 = vpop.eup %2034 }
 0x1f3   : > { %v1260_v29 = vpop.f32.mrf.mxu2  ;;  %v2037_v32 = vpop.eup %2036  ;;  %v1284_v33 = vadd.f32 1.0, %v2035_v30  ;;  %2040 = vpow2.f32 %v1809_v28 }
 0x1f4   : > { %v2039_v34 = vpop.eup %2038  ;;  %v1303_v35 = vadd.f32 1.0, %v2037_v32  ;;  %v1279_v36 = vadd.f32 %v1260_v29, %v1029_v38 }
 0x1f5   : > { %2042 = vrcp.f32 %v1284_v33  ;;  %v1008_v43 = vmul.f32 %v2039_v34, %v1002_v31  ;;  %v1296_v54 = vand.u32 2147483648, %v1284_v33  ;;  %v1294_v56 = vand.u32 2147483647, %v1284_v33 }
 0x1f6   : > { %2044 = vrcp.f32 %v1303_v35  ;;  %v1275_v39 = vpop.f32.mrf.mxu3  ;;  %v1315_v57 = vand.u32 2147483648, %v1303_v35  ;;  %v1313_v58 = vand.u32 2147483647, %v1303_v35  ;;  %vm1290_vm2 = vweird.f32 %v1284_v33 }
 0x1f7   : > { %v1017_v44 = vsel %vm1016_vm13, %v1008_v43, 0.0  ;;  %v2612_v40 = vsel %vm1016_vm13, %v1008_v43, %v2290_v40   ;;  %v1297_v63 = vor.u32 1.1754944e-38, %v1296_v54  ;;  %vm1309_vm4 = vweird.f32 %v1303_v35 }
 0x1f8   : > { %v2667_v45 = vmov %v2612_v40  ;;  %1020 = vst [vmem:[%s1019_s19] sm:$0xff] %v1017_v44  ;;  %vm1295_vm5 = vcmp.eq.f32.partialorder %v1294_v56, 8.507059e+37  ;;  %v1316_v3 = vor.u32 1.1754944e-38, %v1315_v57  ;;  %vm1314_vm7 = vcmp.eq.f32.partialorder %v1313_v58, 8.507059e+37 }
 0x1f9   : > { %v2041_v46 = vpop.eup %2040  ;;  %v2670_v43 = vmov %v2666_v22  ;;  %1365 = vst [vmem:[#allocation17] sm:$0xff] (%p682_p0), %v2667_v45  ;;  %1383 = dma.vmem_to_hbm [thread:$0]  (%p682_p0), %s1376_s28, 1024, %s1378_s3, [#allocation8], %s2306_s26, %s2306_s26, %s2307_s0  }
 0x1fa   : > { %v1323_v37 = vadd.f32 1.0, %v2041_v46 }
 0x1fb   : > { %v1262_v47 = vpop.f32.mrf.mxu2  ;;  %v2043_v48 = vpop.eup %2042 }
 0x1fc   : > { %v2045_v49 = vpop.eup %2044  ;;  %v1286_v52 = vmul.f32 %v2043_v48, %v1284_v33  ;;  %2046 = vrcp.f32 %v1323_v37  ;;  %vm1291_vm0 = vweird.f32 %v2043_v48  ;;  %v1335_v14 = vand.u32 2147483648, %v1323_v37 }
 0x1fd   : > { %v1305_v41 = vmul.f32 %v2045_v49, %v1303_v35  ;;  %2048 = vtanh.f32 %v1279_v36  ;;  %vm1310_vm1 = vweird.f32 %v2045_v49  ;;  %vm1292_vm3 = vmor %vm1290_vm2, %vm1291_vm0  ;;  %vm1329_vm10 = vweird.f32 %v1323_v37 }
 0x1fe   : > { %v1287_v50 = vsub.f32 1.0, %v1286_v52  ;;  %vm1311_vm6 = vmor %vm1309_vm4, %vm1310_vm1  ;;  %v1333_v16 = vand.u32 2147483647, %v1323_v37  ;;  %v1336_v18 = vor.u32 1.1754944e-38, %v1335_v14 }
 0x1ff   : > { %v1306_v51 = vsub.f32 1.0, %v1305_v41 }
 0x200   : > { %v1288_v55 = vmul.f32 %v2043_v48, %v1287_v50  ;;  %vm1334_vm12 = vcmp.eq.f32.partialorder %v1333_v16, 8.507059e+37 }
 0x201   : > { %v1307_v40 = vmul.f32 %v2045_v49, %v1306_v51 }
 0x202   : > { %v2047_v59 = vpop.eup %2046  ;;  %v1289_v60 = vadd.f32 %v2043_v48, %v1288_v55 }
 0x203   : > { %v2049_v61 = vpop.eup %2048  ;;  %v1325_v62 = vmul.f32 %v2047_v59, %v1323_v37  ;;  %v1308_v1 = vadd.f32 %v2045_v49, %v1307_v40  ;;  %vm1330_vm9 = vweird.f32 %v2047_v59  ;;  %v2671_v40 = vmov %v2667_v45 }
 0x204   : > { %v1293_v2 = vsel %vm1292_vm3, %v2043_v48, %v1289_v60  ;;  %vm1331_vm11 = vmor %vm1329_vm10, %vm1330_vm9 }
 0x205   : > { %v1298_v4 = vsel %vm1295_vm5, %v1297_v63, %v1293_v2  ;;  %v1312_v6 = vsel %vm1311_vm6, %v2045_v49, %v1308_v1  ;;  %v1326_v7 = vsub.f32 1.0, %v1325_v62 }
 0x206   : > { %v1340_v8 = vmul.f32 %v2049_v61, %v1298_v4  ;;  %v1317_v9 = vsel %vm1314_vm7, %v1316_v3, %v1312_v6 }
 0x207   : > { %v1327_v10 = vmul.f32 %v2047_v59, %v1326_v7  ;;  %v1339_v11 = vmul.f32 %v2278_v53, %v1317_v9 }
 0x209   : > { %v1341_v12 = vadd.f32 %v1340_v8, %v1339_v11  ;;  %v1328_v13 = vadd.f32 %v2047_v59, %v1327_v10 }
 0x20b   : > { %2050 = vtanh.f32 %v1341_v12  ;;  %v1357_v15 = vsel %vm1351_vm8, %v1341_v12, %v2278_v53   ;;  %v1332_v17 = vsel %vm1331_vm11, %v2047_v59, %v1328_v13 }
 0x20c   : > { %v1337_v20 = vsel %vm1334_vm12, %v1336_v18, %v1332_v17  ;;  %v2668_v53 = vmov %v1357_v15  ;;  %1370 = vst [vmem:[#allocation18 + $0x8] sm:$0xff] (%p682_p0), %v1357_v15 }
 0x20d   :  { %1426 = dma.vmem_to_hbm [thread:$0]  (%p682_p0), %s1419_s4, 256, %s1421_s15, [#allocation19], %s2306_s26, %s2306_s26, %s2307_s0  }
 0x211   : > { %v2051_v19 = vpop.eup %2050  ;;  %684 = sbr.rel (!%p682_p0) target bundleno = 296 (0x128), region = 112 }
 0x212   : > { %v1343_v21 = vmul.f32 %v2051_v19, %v1337_v20 }
 0x214   : > { %v1352_v23 = vsel %vm1351_vm8, %v1343_v21, 0.0  ;;  %v1356_v24 = vsel %vm1351_vm8, %v1343_v21, %v2282_v42  }
 0x215   : > { %1355 = vst [vmem:[%s1354_s21] sm:$0xff] %v1352_v23  ;;  %v2669_v42 = vmov %v1356_v24 }
 0x216   :  { %1367 = vst [vmem:[#allocation17 + $0x8] sm:$0xff] %v1356_v24  ;;  %1400 = dma.vmem_to_hbm [thread:$0]  %s1393_s25, 1024, %s1395_s1, [#allocation16], %s2306_s26, %s2306_s26, %s2307_s0  }
 0x217   :  { %1413 = dma.vmem_to_hbm [thread:$0]  %s1406_s11, 256, %s1408_s2, [#allocation16], %s2306_s26, %s2306_s26, %s2307_s0  }
 0x218   :  { %2270 = dma.done.wait [#allocation8], 1024  }
 0x219   :  { %2271 = vsyncadd [#allocation8], 4294966272 }
 0x21a   :  { %2272 = dma.done.wait [#allocation16], 1280  }
 0x21b   :  { %2273 = vsyncadd [#allocation16], 4294966016 }
 0x21c   :  { %2274 = dma.done.wait [#allocation19], 256  }
 0x21d   :  { %2275 = vsyncadd [#allocation19], 4294967040 }
 0x21e   :  { %1443 = vsyncpa [#allocation7], 1 }
 0x21f   :  { %1444 = vsyncpa [#allocation10], 1 }
 0x220   :  { %1445 = vsyncpa [#allocation13], 1 }
 0x221   :  { %1446 = vsyncpa [#allocation8], 1 }
 0x222   :  { %1447 = vsyncpa [#allocation16], 1 }
 0x223   :  { %1448 = vsyncpa [#allocation19], 1 }

</bundles_post_ra>
